<compile_context>
chip_gen: v7x
topology: tpu7x:2x2x1
jax: 0.10.0
libtpu: 0.0.40
codegen_flags: <defaults>
</compile_context>

<pallas_src>
import functools

import jax
import jax.numpy as jnp
from jax.experimental import pallas as pl
from jax.experimental.pallas import tpu as pltpu


def _round_up(x: int, m: int) -> int:
    return ((x + m - 1) // m) * m


def _apply_activation(activation: str, x):
    if activation == "relu":
        # torch.clamp(x, min=0)
        return jnp.maximum(x, 0.0)
    elif activation == "tanh":
        return jnp.tanh(x)
    elif activation == "sigmoid":
        clamped = jnp.clip(x, -50.0, 50.0)
        return 1.0 / (1.0 + jnp.exp(-clamped))
    elif activation == "none":
        return x
    else:
        raise ValueError(f"Invalid activation function: {activation}")


def _mlp_fused_kernel(x_ref, *rest, activation: str, n_layers: int):
    """Fused MLP: x -> [dot + bias + act]*(L-1) -> dot + bias.

    rest = (w0, b0, w1, b1, ..., w_{L-1}, b_{L-1}, o_ref)
      x:  [TILE_B, in_pad]
      wi: [in_pad_i, out_pad_i]   (PyTorch weight.T, zero-padded to x128)
      bi: [1, out_pad_i]
      o:  [TILE_B, out_pad_last]
    Intermediate activations stay in VMEM/vregs — no HBM round trip.
    """
    o_ref = rest[-1]
    params = rest[:-1]
    h = x_ref[...]
    for i in range(n_layers):
        w_ref = params[2 * i]
        b_ref = params[2 * i + 1]
        y = jnp.dot(h, w_ref[...], preferred_element_type=jnp.float32)
        y = y + b_ref[...]
        act = activation if i < n_layers - 1 else "none"
        h = _apply_activation(act, y)
    o_ref[...] = h.astype(o_ref.dtype)


def mlp_forward_fused(x, weights, biases, activation: str, *, tile_b=None):
    """Run the whole MLP in one pallas_call.

    x:       [B, in_pad]               (features already zero-padded to x128)
    weights: list of [in_pad_i, out_pad_i]
    biases:  list of [1, out_pad_i]
    """
    B, in_pad = x.shape
    n_layers = len(weights)
    out_pad = weights[-1].shape[1]

    # Batch tile: at least 128 rows for full MXU cadence, capped at 512 so the
    # x / output double-buffers stay well inside v7x's 64 MiB VMEM.
    if tile_b is None:
        tile_b = min(512, _round_up(max(B, 1), 128))
    b_pad = _round_up(B, tile_b)
    if b_pad != B:
        x = jnp.pad(x, ((0, b_pad - B), (0, 0)))

    grid = (b_pad // tile_b,)

    in_specs = [pl.BlockSpec((tile_b, in_pad), lambda i: (i, 0))]
    flat_params = []
    for w, b in zip(weights, biases):
        # Constant index_map -> weights/biases stay resident across grid steps.
        in_specs.append(pl.BlockSpec(w.shape, lambda i: (0, 0)))
        in_specs.append(pl.BlockSpec(b.shape, lambda i: (0, 0)))
        flat_params.append(w)
        flat_params.append(b)

    kernel = functools.partial(
        _mlp_fused_kernel, activation=activation, n_layers=n_layers
    )
    out = pl.pallas_call(
        kernel,
        out_shape=jax.ShapeDtypeStruct((b_pad, out_pad), jnp.float32),
        grid=grid,
        in_specs=in_specs,
        out_specs=pl.BlockSpec((tile_b, out_pad), lambda i: (i, 0)),
        compiler_params=pltpu.CompilerParams(
            dimension_semantics=("parallel",),
        ),
    )(x, *flat_params)
    return out[:B]


class MLPPallas:
    """JAX/Pallas reimplementation of the PyTorch MLP forward pass."""

    def __init__(self, input_size, hidden_sizes, num_classes,
                 activation: str = "relu", key=None):
        assert len(hidden_sizes) > 0, "You should at least have one hidden layer"
        assert activation in ["tanh", "relu", "sigmoid"], "Invalid choice of activation"
        self.activation = activation
        self.input_size = input_size
        self.num_classes = num_classes
        if key is None:
            key = jax.random.PRNGKey(0)

        sizes = [input_size] + list(hidden_sizes) + [num_classes]
        # Pad every feature dim to a multiple of 128 (lane-dense stores, full MXU).
        self.padded_sizes = [_round_up(s, 128) for s in sizes]

        self.weights = []      # padded, [in_pad, out_pad]  (PyTorch weight.T)
        self.biases = []       # padded, [1, out_pad]
        self.weights_ref = []  # unpadded, [in, out] (for the pure-JAX check)
        for li, (in_f, out_f) in enumerate(zip(sizes[:-1], sizes[1:])):
            key, sub = jax.random.split(key)
            # glorot normal: std = sqrt(2 / (fan_in + fan_out)); bias = 0
            std = (2.0 / (in_f + out_f)) ** 0.5
            w = jax.random.normal(sub, (out_f, in_f), dtype=jnp.float32) * std
            w_t = jnp.asarray(w.T)                       # [in, out]
            self.weights_ref.append(w_t)

            in_p, out_p = self.padded_sizes[li], self.padded_sizes[li + 1]
            w_pad = jnp.zeros((in_p, out_p), dtype=jnp.float32)
            w_pad = w_pad.at[:in_f, :out_f].set(w_t)
            self.weights.append(w_pad)
            self.biases.append(jnp.zeros((1, out_p), dtype=jnp.float32))

    def __call__(self, images):
        # images: [batch, channels, height, width] (NCHW)
        batch_size = images.shape[0]
        x = images.reshape(batch_size, -1).astype(jnp.float32)
        in_f = x.shape[1]
        in_p = self.padded_sizes[0]
        if in_p != in_f:
            x = jnp.pad(x, ((0, 0), (0, in_p - in_f)))
        logits_pad = mlp_forward_fused(x, self.weights, self.biases, self.activation)
        return logits_pad[:, : self.num_classes]


def _reference_forward(mlp: MLPPallas, images):
    """Pure-JAX reference (unpadded weights) for a sanity check."""
    batch_size = images.shape[0]
    x = images.reshape(batch_size, -1).astype(jnp.float32)
    for i in range(len(mlp.weights_ref) - 1):
        x = x @ mlp.weights_ref[i]          # bias is zero
        x = _apply_activation(mlp.activation, x)
    return x @ mlp.weights_ref[-1]


if __name__ == "__main__":
    key = jax.random.PRNGKey(0)
    k_img, k_params = jax.random.split(key)

    batch, channels, height, width = 2, 4, 16, 16
    input_size = channels * height * width          # 1024
    hidden_sizes = [32, 32]
    num_classes = 10

    images = jax.random.normal(k_img, (batch, channels, height, width),
                               dtype=jnp.float32)

    mlp = MLPPallas(input_size, hidden_sizes, num_classes,
                    activation="relu", key=k_params)

    logits = mlp(images)
    logits = jax.block_until_ready(logits)
    assert logits.shape == (batch, num_classes)

    ref = _reference_forward(mlp, images)
    assert jnp.allclose(logits, ref, atol=1e-3, rtol=1e-3), (
        float(jnp.max(jnp.abs(logits - ref)))
    )

    print("KERNEL_OK")
</pallas_src>

<mosaic_0001>
module attributes {stable_mosaic.version = 11 : i64} {
  func.func @_mlp_fused_kernel(%arg0: i32, %arg1: memref<128x1024xf32, #tpu.memory_space<vmem>>, %arg2: memref<1024x128xf32, #tpu.memory_space<vmem>>, %arg3: memref<1x128xf32, #tpu.memory_space<vmem>>, %arg4: memref<128x128xf32, #tpu.memory_space<vmem>>, %arg5: memref<1x128xf32, #tpu.memory_space<vmem>>, %arg6: memref<128x128xf32, #tpu.memory_space<vmem>>, %arg7: memref<1x128xf32, #tpu.memory_space<vmem>>, %arg8: memref<128x128xf32, #tpu.memory_space<vmem>>) attributes {dimension_semantics = [#tpu.dimension_semantics<parallel>], iteration_bounds = array<i64: 1>, scalar_prefetch = 0 : i64, scratch_operands = 0 : i64, tpu.core_type = #tpu.core_type<tc>, window_params = [{transform_indices = @transform_0, window_bounds = array<i64: 128, 1024>}, {pipeline_mode = #tpu.pipeline_mode<synchronous>, transform_indices = @transform_1, window_bounds = array<i64: 1024, 128>}, {pipeline_mode = #tpu.pipeline_mode<synchronous>, transform_indices = @transform_2, window_bounds = array<i64: 1, 128>}, {pipeline_mode = #tpu.pipeline_mode<synchronous>, transform_indices = @transform_3, window_bounds = array<i64: 128, 128>}, {pipeline_mode = #tpu.pipeline_mode<synchronous>, transform_indices = @transform_4, window_bounds = array<i64: 1, 128>}, {pipeline_mode = #tpu.pipeline_mode<synchronous>, transform_indices = @transform_5, window_bounds = array<i64: 128, 128>}, {pipeline_mode = #tpu.pipeline_mode<synchronous>, transform_indices = @transform_6, window_bounds = array<i64: 1, 128>}, {transform_indices = @transform_7, window_bounds = array<i64: 128, 128>}]} {
    %c0 = arith.constant 0 : index
    %c0_0 = arith.constant 0 : index
    %0 = vector.load %arg1[%c0, %c0_0] : memref<128x1024xf32, #tpu.memory_space<vmem>>, vector<128x1024xf32>
    %c0_1 = arith.constant 0 : index
    %c0_2 = arith.constant 0 : index
    %1 = vector.load %arg2[%c0_1, %c0_2] : memref<1024x128xf32, #tpu.memory_space<vmem>>, vector<1024x128xf32>
    %cst = arith.constant dense<0.000000e+00> : vector<128x128xf32>
    %2 = tpu.matmul %0, %1, %cst {dimension_numbers = #tpu.dot_dimension_numbers<[1], [0], [0], [1], [0, 0, 1, 1], [], []>} : vector<128x1024xf32>, vector<1024x128xf32>, vector<128x128xf32> -> vector<128x128xf32>
    %c0_3 = arith.constant 0 : index
    %c0_4 = arith.constant 0 : index
    %3 = vector.load %arg3[%c0_3, %c0_4] : memref<1x128xf32, #tpu.memory_space<vmem>>, vector<1x128xf32>
    %4 = vector.broadcast %3 : vector<1x128xf32> to vector<128x128xf32>
    %5 = arith.addf %2, %4 : vector<128x128xf32>
    %cst_5 = arith.constant 0.000000e+00 : f32
    %6 = vector.broadcast %cst_5 : f32 to vector<128x128xf32>
    %7 = arith.maximumf %5, %6 : vector<128x128xf32>
    %c0_6 = arith.constant 0 : index
    %c0_7 = arith.constant 0 : index
    %8 = vector.load %arg4[%c0_6, %c0_7] : memref<128x128xf32, #tpu.memory_space<vmem>>, vector<128x128xf32>
    %cst_8 = arith.constant dense<0.000000e+00> : vector<128x128xf32>
    %9 = tpu.matmul %7, %8, %cst_8 {dimension_numbers = #tpu.dot_dimension_numbers<[1], [0], [0], [1], [0, 0, 1, 1], [], []>} : vector<128x128xf32>, vector<128x128xf32>, vector<128x128xf32> -> vector<128x128xf32>
    %c0_9 = arith.constant 0 : index
    %c0_10 = arith.constant 0 : index
    %10 = vector.load %arg5[%c0_9, %c0_10] : memref<1x128xf32, #tpu.memory_space<vmem>>, vector<1x128xf32>
    %11 = vector.broadcast %10 : vector<1x128xf32> to vector<128x128xf32>
    %12 = arith.addf %9, %11 : vector<128x128xf32>
    %cst_11 = arith.constant 0.000000e+00 : f32
    %13 = vector.broadcast %cst_11 : f32 to vector<128x128xf32>
    %14 = arith.maximumf %12, %13 : vector<128x128xf32>
    %c0_12 = arith.constant 0 : index
    %c0_13 = arith.constant 0 : index
    %15 = vector.load %arg6[%c0_12, %c0_13] : memref<128x128xf32, #tpu.memory_space<vmem>>, vector<128x128xf32>
    %cst_14 = arith.constant dense<0.000000e+00> : vector<128x128xf32>
    %16 = tpu.matmul %14, %15, %cst_14 {dimension_numbers = #tpu.dot_dimension_numbers<[1], [0], [0], [1], [0, 0, 1, 1], [], []>} : vector<128x128xf32>, vector<128x128xf32>, vector<128x128xf32> -> vector<128x128xf32>
    %c0_15 = arith.constant 0 : index
    %c0_16 = arith.constant 0 : index
    %17 = vector.load %arg7[%c0_15, %c0_16] : memref<1x128xf32, #tpu.memory_space<vmem>>, vector<1x128xf32>
    %18 = vector.broadcast %17 : vector<1x128xf32> to vector<128x128xf32>
    %19 = arith.addf %16, %18 : vector<128x128xf32>
    %c0_17 = arith.constant 0 : index
    %c0_18 = arith.constant 0 : index
    %20 = vector.load %arg8[%c0_17, %c0_18] : memref<128x128xf32, #tpu.memory_space<vmem>>, vector<128x128xf32>
    tpu.vector_store %arg8[%c0_17, %c0_18], %19 {strides = array<i32>} : memref<128x128xf32, #tpu.memory_space<vmem>>, vector<128x128xf32>,
    return
  }
  func.func @transform_0(%arg0: i32) -> (i32, i32) {
    %c0_i32 = arith.constant 0 : i32
    %c0_i32_0 = arith.constant 0 : i32
    return %arg0, %c0_i32 : i32, i32
  }
  func.func @transform_1(%arg0: i32) -> (i32, i32) {
    %c0_i32 = arith.constant 0 : i32
    %c0_i32_0 = arith.constant 0 : i32
    %c0_i32_1 = arith.constant 0 : i32
    return %c0_i32, %c0_i32_0 : i32, i32
  }
  func.func @transform_2(%arg0: i32) -> (i32, i32) {
    %c0_i32 = arith.constant 0 : i32
    %c0_i32_0 = arith.constant 0 : i32
    %c0_i32_1 = arith.constant 0 : i32
    return %c0_i32, %c0_i32_0 : i32, i32
  }
  func.func @transform_3(%arg0: i32) -> (i32, i32) {
    %c0_i32 = arith.constant 0 : i32
    %c0_i32_0 = arith.constant 0 : i32
    %c0_i32_1 = arith.constant 0 : i32
    return %c0_i32, %c0_i32_0 : i32, i32
  }
  func.func @transform_4(%arg0: i32) -> (i32, i32) {
    %c0_i32 = arith.constant 0 : i32
    %c0_i32_0 = arith.constant 0 : i32
    %c0_i32_1 = arith.constant 0 : i32
    return %c0_i32, %c0_i32_0 : i32, i32
  }
  func.func @transform_5(%arg0: i32) -> (i32, i32) {
    %c0_i32 = arith.constant 0 : i32
    %c0_i32_0 = arith.constant 0 : i32
    %c0_i32_1 = arith.constant 0 : i32
    return %c0_i32, %c0_i32_0 : i32, i32
  }
  func.func @transform_6(%arg0: i32) -> (i32, i32) {
    %c0_i32 = arith.constant 0 : i32
    %c0_i32_0 = arith.constant 0 : i32
    %c0_i32_1 = arith.constant 0 : i32
    return %c0_i32, %c0_i32_0 : i32, i32
  }
  func.func @transform_7(%arg0: i32) -> (i32, i32) {
    %c0_i32 = arith.constant 0 : i32
    %c0_i32_0 = arith.constant 0 : i32
    return %arg0, %c0_i32 : i32, i32
  }
}

</mosaic_0001>

<bundles_post_ra>
// kernel: tpu_custom_call.1
= control target key start
LH: loop header
LB: loop body
LE: loop exit
PB: predicated region body
PF: predicated region fallthrough
CT: control target
= control target key end

     0   :  { %12 = vsyncpa [#allocation3], 0  ;;  %s2349_s0 = inlined_call_operand.hbm [shape: f32[128,1024], index: 0, kind: input, shape index: {}]   ;;  %s2350_s1 = inlined_call_operand.hbm [shape: f32[1024,128], index: 1, kind: input, shape index: {}]   ;;  %s2351_s2 = inlined_call_operand.vmem [shape: f32[1,128], index: 2, kind: input, shape index: {}]   ;;  %s2352_s3 = inlined_call_operand.hbm [shape: f32[128,128], index: 3, kind: input, shape index: {}]   ;;  %s2353_s4 = inlined_call_operand.vmem [shape: f32[1,128], index: 4, kind: input, shape index: {}]   ;;  %s2354_s5 = inlined_call_operand.hbm [shape: f32[128,128], index: 5, kind: input, shape index: {}]   ;;  %s2355_s6 = inlined_call_operand.vmem [shape: f32[1,128], index: 6, kind: input, shape index: {}]   ;;  %s2356_s7 = inlined_call_operand.hbm [shape: f32[128,128], index: 7, kind: output, shape index: {}]  }
   0x1   :  { %13 = vsyncpa [#allocation6], 0 }
   0x2   :  { %14 = vsyncpa [#allocation9], 0 }
   0x3   :  { %15 = vsyncpa [#allocation4], 0  ;;  %s2146_s24 = smov [#allocation5]   ;;  %s2028_s28 = scalar_lea.hbm %s2350_s1, 16384 }
   0x4   :  { %s33_s25 = sshll.u32 %s2146_s24, 4  ;;  %p2029_p0 = scmp.ne.s32.totalorder %s2350_s1, %s2028_s28  ;;  %s34_s25 = int_to_ptr.vmem [resolvable:$true] %s33_s25 }
   0x5   :  { %p2032_p1 = scmp.lt.u32.totalorder %s2028_s28, %s2350_s1 }
   0x7   :  { %p2034_p2 = pnand %p2032_p1, %p2029_p0 }
   0x9   :  { %2037 = shalt.err (!%p2034_p2)
}
   0xa   :  { %s2038_s10 = scalar_lea.vmem %s34_s25, 16384  ;;  %p2043_p4 = scmp.lt.s32.totalorder %s34_s25, %s34_s25 }
   0xb   :  { %p2039_p3 = scmp.ne.s32.totalorder %s34_s25, %s2038_s10  ;;  %p2044_p5 = scmp.lt.s32.totalorder %s2038_s10, %s2038_s10 }
   0xd   :  { %p2045_p6 = por %p2044_p5, %p2043_p4 }
   0xf   :  { %p2046_p7 = pnand %p2045_p6, %p2039_p3 }
  0x11   :  { %2049 = shalt.err (!%p2046_p7)
}
  0x12   :  { %s2147_s11 = smov 128   ;;  %s2148_s12 = smov 8  }
  0x13   :  { %39 = dma.hbm_to_vmem [thread:$0]  %s2350_s1, 16384, %s34_s25, [#allocation6], %s2147_s11, %s2147_s11, %s2148_s12  }
  0x14   :  { %s2149_s15 = smov [#allocation2]   ;;  %s2050_s19 = scalar_lea.hbm %s2349_s0, 16384 }
  0x15   :  { %s21_s16 = sshll.u32 %s2149_s15, 4  ;;  %p2051_p8 = scmp.ne.s32.totalorder %s2349_s0, %s2050_s19  ;;  %s22_s16 = int_to_ptr.vmem [resolvable:$true] %s21_s16 }
  0x16   :  { %p2054_p9 = scmp.lt.u32.totalorder %s2050_s19, %s2349_s0 }
  0x18   :  { %p2056_p10 = pnand %p2054_p9, %p2051_p8 }
  0x1a   :  { %2059 = shalt.err (!%p2056_p10)
}
  0x1b   :  { %s2060_s24 = scalar_lea.vmem %s22_s16, 16384  ;;  %p2065_p12 = scmp.lt.s32.totalorder %s22_s16, %s22_s16 }
  0x1c   :  { %p2061_p11 = scmp.ne.s32.totalorder %s22_s16, %s2060_s24  ;;  %p2066_p13 = scmp.lt.s32.totalorder %s2060_s24, %s2060_s24 }
  0x1e   :  { %p2067_p0 = por %p2066_p13, %p2065_p12 }
  0x20   :  { %p2068_p1 = pnand %p2067_p0, %p2061_p11 }
  0x22   :  { %2071 = shalt.err (!%p2068_p1)
}
  0x23   :  { %s2150_s1 = smov 1024   ;;  %s2151_s25 = smov 64  }
  0x24   :  { %27 = dma.hbm_to_vmem [thread:$0]  %s2349_s0, 16384, %s22_s16, [#allocation3], %s2150_s1, %s2150_s1, %s2151_s25  }
  0x25   :  { %s2152_s28 = smov [#allocation7]   ;;  %s2153_s30 = smov [#allocation8]  }
  0x26   :  { %s47_s29 = sshll.u32 %s2152_s28, 4  ;;  %s61_s8 = sshll.u32 %s2153_s30, 4  ;;  %s48_s29 = int_to_ptr.vmem [resolvable:$true] %s47_s29  ;;  %s2222_s8 = int_to_ptr.vmem [resolvable:$true] %s61_s8 }
  0x27   :  { %s2072_s13 = scalar_lea.hbm %s2352_s3, 2048 }
  0x28   :  { %p2073_p2 = scmp.ne.s32.totalorder %s2352_s3, %s2072_s13  ;;  %p2076_p3 = scmp.lt.u32.totalorder %s2072_s13, %s2352_s3 }
  0x2a   :  { %p2078_p4 = pnand %p2076_p3, %p2073_p2 }
  0x2c   :  { %2081 = shalt.err (!%p2078_p4)
}
  0x2d   :  { %s2082_s0 = scalar_lea.vmem %s48_s29, 2048  ;;  %p2087_p6 = scmp.lt.s32.totalorder %s48_s29, %s48_s29 }
  0x2e   :  { %p2083_p5 = scmp.ne.s32.totalorder %s48_s29, %s2082_s0  ;;  %p2088_p7 = scmp.lt.s32.totalorder %s2082_s0, %s2082_s0 }
  0x30   :  { %p2089_p8 = por %p2088_p7, %p2087_p6 }
  0x32   :  { %p2090_p9 = pnand %p2089_p8, %p2083_p5 }
  0x34   :  { %2093 = shalt.err (!%p2090_p9)
}
  0x35   :  { %53 = dma.hbm_to_vmem [thread:$0]  %s2352_s3, 2048, %s48_s29, [#allocation6], %s2147_s11, %s2147_s11, %s2148_s12  }
  0x36   :  { %s2094_s22 = scalar_lea.hbm %s2354_s5, 2048 }
  0x37   :  { %p2095_p10 = scmp.ne.s32.totalorder %s2354_s5, %s2094_s22  ;;  %p2098_p11 = scmp.lt.u32.totalorder %s2094_s22, %s2354_s5 }
  0x39   :  { %p2100_p12 = pnand %p2098_p11, %p2095_p10 }
  0x3b   :  { %2103 = shalt.err (!%p2100_p12)
}
  0x3c   :  { %s2104_s26 = scalar_lea.vmem %s2222_s8, 2048  ;;  %p2109_p0 = scmp.lt.s32.totalorder %s2222_s8, %s2222_s8 }
  0x3d   :  { %p2105_p13 = scmp.ne.s32.totalorder %s2222_s8, %s2104_s26  ;;  %p2110_p1 = scmp.lt.s32.totalorder %s2104_s26, %s2104_s26 }
  0x3f   :  { %p2111_p2 = por %p2110_p1, %p2109_p0 }
  0x41   :  { %p2112_p3 = pnand %p2111_p2, %p2105_p13 }
  0x43   :  { %2115 = shalt.err (!%p2112_p3)
}
  0x44   :  { %67 = dma.hbm_to_vmem [thread:$0]  %s2354_s5, 2048, %s2222_s8, [#allocation9], %s2147_s11, %s2147_s11, %s2148_s12  }
  0x45   :  { %2138 = dma.done.wait [#allocation3], 16384  }
  0x46   :  { %2139 = vsyncadd [#allocation3], 4294950912 }
  0x47   :  { %2140 = dma.done.wait [#allocation6], 18432  }
  0x48   :  { %2141 = vsyncadd [#allocation6], 4294948864 }
  0x49   :  { %2142 = dma.done.wait [#allocation9], 2048  }
  0x4a   :  { %2143 = vsyncadd [#allocation9], 4294965248  ;;  %v226_v0 = vld [vmem:[#allocation5 + $0x80] sm:$0xff]  ;;  %v227_v1 = vld [vmem:[#allocation5 + $0x88] sm:$0xff] }
  0x4b   :  { %v210_v2 = vld [vmem:[#allocation5] sm:$0xff]  ;;  %v1827_v3 = vpack.c.bf16 %v227_v1, %v226_v0  ;;  %v211_v4 = vld [vmem:[#allocation5 + $0x8] sm:$0xff]  ;;  %v228_v11 = vld [vmem:[#allocation5 + $0x90] sm:$0xff] }
  0x4c   :  { %v258_v5 = vld [vmem:[#allocation5 + $0x180] sm:$0xff]  ;;  %v259_v6 = vld [vmem:[#allocation5 + $0x188] sm:$0xff]  ;;  %v1829_v7 = vpack.c.bf16 %v211_v4, %v210_v2  ;;  %v229_v13 = vld [vmem:[#allocation5 + $0x98] sm:$0xff] }
  0x4d   :  { %v1859_v8 = vpack.c.bf16 %v259_v6, %v258_v5  ;;  %v242_v9 = vld [vmem:[#allocation5 + $0x100] sm:$0xff]  ;;  %v243_v10 = vld [vmem:[#allocation5 + $0x108] sm:$0xff]  ;;  %1828 = vmatprep.subr.bf16.mxu0 %v1827_v3  ;;  %v212_v14 = vld [vmem:[#allocation5 + $0x10] sm:$0xff]  ;;  %v1831_v16 = vpack.c.bf16 %v229_v13, %v228_v11 }
  0x4e   :  { %v1861_v12 = vpack.c.bf16 %v243_v10, %v242_v9  ;;  %v213_v15 = vld [vmem:[#allocation5 + $0x18] sm:$0xff]  ;;  %1830 = vmatpush3.bf16.msra.mxu0 %v1829_v7  ;;  %v260_v18 = vld [vmem:[#allocation5 + $0x190] sm:$0xff]  ;;  %v230_v23 = vld [vmem:[#allocation5 + $0xa0] sm:$0xff] }
  0x4f   :  { %1860 = vmatprep.subr.bf16.mxu1 %v1859_v8  ;;  %v1833_v17 = vpack.c.bf16 %v213_v15, %v212_v14  ;;  %v261_v19 = vld [vmem:[#allocation5 + $0x198] sm:$0xff]  ;;  %v244_v20 = vld [vmem:[#allocation5 + $0x110] sm:$0xff]  ;;  %v231_v24 = vld [vmem:[#allocation5 + $0xa8] sm:$0xff]  ;;  %1832 = vmatprep.subr.bf16.mxu0 %v1831_v16 }
  0x50   :  { %1862 = vmatpush3.bf16.msra.mxu1 %v1861_v12  ;;  %v1863_v21 = vpack.c.bf16 %v261_v19, %v260_v18  ;;  %v245_v22 = vld [vmem:[#allocation5 + $0x118] sm:$0xff]  ;;  %v1835_v26 = vpack.c.bf16 %v231_v24, %v230_v23  ;;  %v214_v27 = vld [vmem:[#allocation5 + $0x20] sm:$0xff]  ;;  %v215_v28 = vld [vmem:[#allocation5 + $0x28] sm:$0xff] }
  0x51   :  { %v1865_v25 = vpack.c.bf16 %v245_v22, %v244_v20  ;;  %v262_v29 = vld [vmem:[#allocation5 + $0x1a0] sm:$0xff]  ;;  %v263_v30 = vld [vmem:[#allocation5 + $0x1a8] sm:$0xff]  ;;  %v1837_v33 = vpack.c.bf16 %v215_v28, %v214_v27  ;;  %v232_v35 = vld [vmem:[#allocation5 + $0xb0] sm:$0xff] }
  0x52   :  { %1864 = vmatprep.subr.bf16.mxu1 %v1863_v21  ;;  %v246_v31 = vld [vmem:[#allocation5 + $0x120] sm:$0xff]  ;;  %v247_v32 = vld [vmem:[#allocation5 + $0x128] sm:$0xff]  ;;  %1834 = vmatpush3.bf16.msra.mxu0 %v1833_v17  ;;  %v1867_v34 = vpack.c.bf16 %v263_v30, %v262_v29  ;;  %v233_v36 = vld [vmem:[#allocation5 + $0xb8] sm:$0xff] }
  0x53   :  { %v216_v37 = vld [vmem:[#allocation5 + $0x30] sm:$0xff]  ;;  %1836 = vmatprep.subr.bf16.mxu0 %v1835_v26  ;;  %v1869_v38 = vpack.c.bf16 %v247_v32, %v246_v31  ;;  %v1839_v39 = vpack.c.bf16 %v233_v36, %v232_v35  ;;  %v217_v40 = vld [vmem:[#allocation5 + $0x38] sm:$0xff]  ;;  %v234_v46 = vld [vmem:[#allocation5 + $0xc0] sm:$0xff] }
  0x54   :  { %1866 = vmatpush3.bf16.msra.mxu1 %v1865_v25  ;;  %v264_v41 = vld [vmem:[#allocation5 + $0x1b0] sm:$0xff]  ;;  %v265_v42 = vld [vmem:[#allocation5 + $0x1b8] sm:$0xff]  ;;  %v235_v47 = vld [vmem:[#allocation5 + $0xc8] sm:$0xff]  ;;  %v1841_v48 = vpack.c.bf16 %v217_v40, %v216_v37 }
  0x55   :  { %1868 = vmatprep.subr.bf16.mxu1 %v1867_v34  ;;  %v1871_v43 = vpack.c.bf16 %v265_v42, %v264_v41  ;;  %v248_v44 = vld [vmem:[#allocation5 + $0x130] sm:$0xff]  ;;  %v249_v45 = vld [vmem:[#allocation5 + $0x138] sm:$0xff]  ;;  %v266_v49 = vld [vmem:[#allocation5 + $0x1c0] sm:$0xff]  ;;  %v1843_v52 = vpack.c.bf16 %v235_v47, %v234_v46 }
  0x56   :  { %1838 = vmatpush3.bf16.msra.mxu0 %v1837_v33  ;;  %v267_v50 = vld [vmem:[#allocation5 + $0x1c8] sm:$0xff]  ;;  %v1873_v51 = vpack.c.bf16 %v249_v45, %v248_v44  ;;  %v218_v53 = vld [vmem:[#allocation5 + $0x40] sm:$0xff]  ;;  %v236_v58 = vld [vmem:[#allocation5 + $0xd0] sm:$0xff] }
  0x57   :  { %1840 = vmatprep.subr.bf16.mxu0 %v1839_v39  ;;  %v219_v54 = vld [vmem:[#allocation5 + $0x48] sm:$0xff]  ;;  %v250_v55 = vld [vmem:[#allocation5 + $0x140] sm:$0xff]  ;;  %v1875_v56 = vpack.c.bf16 %v267_v50, %v266_v49  ;;  %v237_v59 = vld [vmem:[#allocation5 + $0xd8] sm:$0xff] }
  0x58   :  { %1870 = vmatpush3.bf16.msra.mxu1 %v1869_v38  ;;  %v251_v57 = vld [vmem:[#allocation5 + $0x148] sm:$0xff]  ;;  %v268_v60 = vld [vmem:[#allocation5 + $0x1d0] sm:$0xff]  ;;  %v269_v61 = vld [vmem:[#allocation5 + $0x1d8] sm:$0xff]  ;;  %v1845_v62 = vpack.c.bf16 %v219_v54, %v218_v53  ;;  %v1847_v0 = vpack.c.bf16 %v237_v59, %v236_v58 }
  0x59   :  { %1872 = vmatprep.subr.bf16.mxu1 %v1871_v43  ;;  %v1877_v63 = vpack.c.bf16 %v251_v57, %v250_v55  ;;  %v220_v1 = vld [vmem:[#allocation5 + $0x50] sm:$0xff]  ;;  %v221_v2 = vld [vmem:[#allocation5 + $0x58] sm:$0xff]  ;;  %v1879_v4 = vpack.c.bf16 %v269_v61, %v268_v60  ;;  %v238_v6 = vld [vmem:[#allocation5 + $0xe0] sm:$0xff] }
  0x5a   :  { %1842 = vmatpush3.bf16.msra.mxu0 %v1841_v48  ;;  %v252_v3 = vld [vmem:[#allocation5 + $0x150] sm:$0xff]  ;;  %v253_v5 = vld [vmem:[#allocation5 + $0x158] sm:$0xff]  ;;  %v239_v7 = vld [vmem:[#allocation5 + $0xe8] sm:$0xff]  ;;  %v1849_v10 = vpack.c.bf16 %v221_v2, %v220_v1 }
  0x5b   :  { %1844 = vmatprep.subr.bf16.mxu0 %v1843_v52  ;;  %v270_v8 = vld [vmem:[#allocation5 + $0x1e0] sm:$0xff]  ;;  %v271_v9 = vld [vmem:[#allocation5 + $0x1e8] sm:$0xff]  ;;  %v1881_v13 = vpack.c.bf16 %v253_v5, %v252_v3  ;;  %v1851_v14 = vpack.c.bf16 %v239_v7, %v238_v6  ;;  %v240_v19 = vld [vmem:[#allocation5 + $0xf0] sm:$0xff] }
  0x5c   :  { %1874 = vmatpush3.bf16.msra.mxu1 %v1873_v51  ;;  %v222_v11 = vld [vmem:[#allocation5 + $0x60] sm:$0xff]  ;;  %v83_v12 = vld [vmem:[#allocation2 + $0x8] sm:$0xff]  ;;  %v1883_v18 = vpack.c.bf16 %v271_v9, %v270_v8  ;;  %v241_v20 = vld [vmem:[#allocation5 + $0xf8] sm:$0xff] }
  0x5d   :  { %1876 = vmatprep.subr.bf16.mxu1 %v1875_v56  ;;  %v223_v15 = vld [vmem:[#allocation5 + $0x68] sm:$0xff]  ;;  %v254_v16 = vld [vmem:[#allocation5 + $0x160] sm:$0xff]  ;;  %409 = vmatprep.mubr.f32.mxu0 %v83_v12  ;;  %v85_v21 = vld [vmem:[#allocation2 + $0x18] sm:$0xff]  ;;  %v1855_v26 = vpack.c.bf16 %v241_v20, %v240_v19 }
  0x5e   :  { %1846 = vmatpush3.bf16.msra.mxu0 %v1845_v62  ;;  %v255_v17 = vld [vmem:[#allocation5 + $0x168] sm:$0xff]  ;;  %v272_v22 = vld [vmem:[#allocation5 + $0x1f0] sm:$0xff]  ;;  %v273_v23 = vld [vmem:[#allocation5 + $0x1f8] sm:$0xff]  ;;  %554 = vmatprep.mubr.f32.mxu1 %v85_v21  ;;  %v1853_v24 = vpack.c.bf16 %v223_v15, %v222_v11 }
  0x5f   :  { %1848 = vmatprep.subr.bf16.mxu0 %v1847_v0  ;;  %v1885_v25 = vpack.c.bf16 %v255_v17, %v254_v16  ;;  %v224_v27 = vld [vmem:[#allocation5 + $0x70] sm:$0xff]  ;;  %v225_v28 = vld [vmem:[#allocation5 + $0x78] sm:$0xff]  ;;  %v1887_v30 = vpack.c.bf16 %v273_v23, %v272_v22  ;;  %v290_v32 = vld [vmem:[#allocation5 + $0x280] sm:$0xff] }
  0x60   :  { %1878 = vmatpush3.bf16.msra.mxu1 %v1877_v63  ;;  %v256_v29 = vld [vmem:[#allocation5 + $0x170] sm:$0xff]  ;;  %v257_v31 = vld [vmem:[#allocation5 + $0x178] sm:$0xff]  ;;  %v291_v33 = vld [vmem:[#allocation5 + $0x288] sm:$0xff]  ;;  %v1857_v36 = vpack.c.bf16 %v225_v28, %v224_v27 }
  0x61   :  { %1880 = vmatprep.subr.bf16.mxu1 %v1879_v4  ;;  %v322_v34 = vld [vmem:[#allocation5 + $0x380] sm:$0xff]  ;;  %v323_v35 = vld [vmem:[#allocation5 + $0x388] sm:$0xff]  ;;  %v1889_v37 = vpack.c.bf16 %v257_v31, %v256_v29  ;;  %v1891_v38 = vpack.c.bf16 %v291_v33, %v290_v32  ;;  %v292_v44 = vld [vmem:[#allocation5 + $0x290] sm:$0xff] }
  0x62   :  { %1850 = vmatpush3.bf16.msra.mxu0 %v1849_v10  ;;  %v274_v39 = vld [vmem:[#allocation5 + $0x200] sm:$0xff]  ;;  %v275_v40 = vld [vmem:[#allocation5 + $0x208] sm:$0xff]  ;;  %v1923_v41 = vpack.c.bf16 %v323_v35, %v322_v34  ;;  %v293_v45 = vld [vmem:[#allocation5 + $0x298] sm:$0xff] }
  0x63   :  { %1852 = vmatprep.subr.bf16.mxu0 %v1851_v14  ;;  %v306_v42 = vld [vmem:[#allocation5 + $0x300] sm:$0xff]  ;;  %v307_v43 = vld [vmem:[#allocation5 + $0x308] sm:$0xff]  ;;  %v1893_v47 = vpack.c.bf16 %v275_v40, %v274_v39  ;;  %v324_v48 = vld [vmem:[#allocation5 + $0x390] sm:$0xff]  ;;  %v1895_v54 = vpack.c.bf16 %v293_v45, %v292_v44 }
  0x64   :  { %1882 = vmatpush3.bf16.msra.mxu1 %v1881_v13  ;;  %v82_v46 = vld [vmem:[#allocation2] sm:$0xff]  ;;  %v325_v49 = vld [vmem:[#allocation5 + $0x398] sm:$0xff]  ;;  %v84_v50 = vld [vmem:[#allocation2 + $0x10] sm:$0xff]  ;;  %v1925_v52 = vpack.c.bf16 %v307_v43, %v306_v42 }
  0x65   :  { %1884 = vmatprep.subr.bf16.mxu1 %v1883_v18  ;;  %v91_v51 = vld [vmem:[#allocation2 + $0x48] sm:$0xff]  ;;  %v93_v53 = vld [vmem:[#allocation2 + $0x58] sm:$0xff]  ;;  %v276_v55 = vld [vmem:[#allocation5 + $0x210] sm:$0xff]  ;;  %v1927_v58 = vpack.c.bf16 %v325_v49, %v324_v48 }
  0x66   :  { %1854 = vmatpush3.bf16.msra.mxu0 %v1853_v24  ;;  %v277_v56 = vld [vmem:[#allocation5 + $0x218] sm:$0xff]  ;;  %v308_v57 = vld [vmem:[#allocation5 + $0x310] sm:$0xff]  ;;  %v294_v60 = vld [vmem:[#allocation5 + $0x2a0] sm:$0xff] }
  0x67   :  { %1856 = vmatprep.subr.bf16.mxu0 %v1855_v26  ;;  %v309_v59 = vld [vmem:[#allocation5 + $0x318] sm:$0xff]  ;;  %v295_v61 = vld [vmem:[#allocation5 + $0x2a8] sm:$0xff]  ;;  %v90_v62 = vld [vmem:[#allocation2 + $0x40] sm:$0xff]  ;;  %v1897_v4 = vpack.c.bf16 %v277_v56, %v276_v55 }
  0x68   :  { %1886 = vmatpush3.bf16.msra.mxu1 %v1885_v25  ;;  %v326_v63 = vld [vmem:[#allocation5 + $0x3a0] sm:$0xff]  ;;  %v327_v0 = vld [vmem:[#allocation5 + $0x3a8] sm:$0xff]  ;;  %v92_v1 = vld [vmem:[#allocation2 + $0x50] sm:$0xff]  ;;  %v1929_v5 = vpack.c.bf16 %v309_v59, %v308_v57  ;;  %v1899_v6 = vpack.c.bf16 %v295_v61, %v294_v60 }
  0x69   :  { %1888 = vmatprep.subr.bf16.mxu1 %v1887_v30  ;;  %v99_v2 = vld [vmem:[#allocation2 + $0x88] sm:$0xff]  ;;  %v101_v3 = vld [vmem:[#allocation2 + $0x98] sm:$0xff]  ;;  %v278_v7 = vld [vmem:[#allocation5 + $0x220] sm:$0xff]  ;;  %v1931_v10 = vpack.c.bf16 %v327_v0, %v326_v63 }
  0x6a   :  { %1858 = vmatpush3.bf16.msra.mxu0 %v1857_v36  ;;  %v279_v8 = vld [vmem:[#allocation5 + $0x228] sm:$0xff]  ;;  %v310_v9 = vld [vmem:[#allocation5 + $0x320] sm:$0xff]  ;;  %v296_v12 = vld [vmem:[#allocation5 + $0x2b0] sm:$0xff] }
  0x6b   :  { %1892 = vmatprep.subr.bf16.mxu0 %v1891_v38  ;;  %v311_v11 = vld [vmem:[#allocation5 + $0x328] sm:$0xff]  ;;  %v297_v13 = vld [vmem:[#allocation5 + $0x2b8] sm:$0xff]  ;;  %v98_v14 = vld [vmem:[#allocation2 + $0x80] sm:$0xff]  ;;  %v1901_v20 = vpack.c.bf16 %v279_v8, %v278_v7 }
  0x6c   :  { %1890 = vmatpush3.bf16.msra.mxu1 %v1889_v37  ;;  %v328_v15 = vld [vmem:[#allocation5 + $0x3b0] sm:$0xff]  ;;  %v329_v16 = vld [vmem:[#allocation5 + $0x3b8] sm:$0xff]  ;;  %v107_v18 = vld [vmem:[#allocation2 + $0xc8] sm:$0xff]  ;;  %v1933_v21 = vpack.c.bf16 %v311_v11, %v310_v9  ;;  %v1903_v22 = vpack.c.bf16 %v297_v13, %v296_v12 }
  0x6d   :  { %1924 = vmatprep.subr.bf16.mxu1 %v1923_v41  ;;  %410 = vmatmul.mubr.f32.vlgmr.msra.gmra.mrb[0].mxu0 %v82_v46  ;;  %v100_v17 = vld [vmem:[#allocation2 + $0x90] sm:$0xff]  ;;  %v109_v19 = vld [vmem:[#allocation2 + $0xd8] sm:$0xff]  ;;  %v1935_v26 = vpack.c.bf16 %v329_v16, %v328_v15  ;;  %v298_v28 = vld [vmem:[#allocation5 + $0x2c0] sm:$0xff] }
  0x6e   :  { %1894 = vmatpush3.bf16.msra.mxu0 %v1893_v47  ;;  %414 = vmatprep.mubr.f32.mxu0 %v91_v51  ;;  %v280_v23 = vld [vmem:[#allocation5 + $0x230] sm:$0xff]  ;;  %v281_v24 = vld [vmem:[#allocation5 + $0x238] sm:$0xff]  ;;  %v299_v29 = vld [vmem:[#allocation5 + $0x2c8] sm:$0xff] }
  0x6f   :  { %555 = vmatmul.mubr.f32.vlgmr.msra.gmra.mrb[0].mxu1 %v84_v50  ;;  %1896 = vmatprep.subr.bf16.mxu0 %v1895_v54  ;;  %v312_v25 = vld [vmem:[#allocation5 + $0x330] sm:$0xff]  ;;  %v313_v27 = vld [vmem:[#allocation5 + $0x338] sm:$0xff]  ;;  %v106_v30 = vld [vmem:[#allocation2 + $0xc0] sm:$0xff]  ;;  %v1905_v33 = vpack.c.bf16 %v281_v24, %v280_v23  ;;  %v1907_v38 = vpack.c.bf16 %v299_v29, %v298_v28 }
  0x70   :  { %1926 = vmatpush3.bf16.msra.mxu1 %v1925_v52  ;;  %559 = vmatprep.mubr.f32.mxu1 %v93_v53  ;;  %v108_v31 = vld [vmem:[#allocation2 + $0xd0] sm:$0xff]  ;;  %v115_v32 = vld [vmem:[#allocation2 + $0x108] sm:$0xff]  ;;  %v330_v34 = vld [vmem:[#allocation5 + $0x3c0] sm:$0xff]  ;;  %v1937_v37 = vpack.c.bf16 %v313_v27, %v312_v25 }
  0x71   :  { %415 = vmatmul.mubr.f32.gmra.mrb[2].mxu0 %v90_v62  ;;  %1928 = vmatprep.subr.bf16.mxu1 %v1927_v58  ;;  %v331_v35 = vld [vmem:[#allocation5 + $0x3c8] sm:$0xff]  ;;  %v117_v36 = vld [vmem:[#allocation2 + $0x118] sm:$0xff]  ;;  %v282_v39 = vld [vmem:[#allocation5 + $0x240] sm:$0xff] }
  0x72   :  { %419 = vmatprep.mubr.f32.mxu0 %v99_v2  ;;  %1898 = vmatpush3.bf16.msra.mxu0 %v1897_v4  ;;  %v283_v40 = vld [vmem:[#allocation5 + $0x248] sm:$0xff]  ;;  %v1939_v41 = vpack.c.bf16 %v331_v35, %v330_v34  ;;  %v314_v42 = vld [vmem:[#allocation5 + $0x340] sm:$0xff]  ;;  %v116_v45 = vld [vmem:[#allocation2 + $0x110] sm:$0xff] }
  0x73   :  { %560 = vmatmul.mubr.f32.gmra.mrb[2].mxu1 %v92_v1  ;;  %1900 = vmatprep.subr.bf16.mxu0 %v1899_v6  ;;  %v315_v43 = vld [vmem:[#allocation5 + $0x348] sm:$0xff]  ;;  %v114_v44 = vld [vmem:[#allocation2 + $0x100] sm:$0xff]  ;;  %v300_v46 = vld [vmem:[#allocation5 + $0x2d0] sm:$0xff]  ;;  %v1909_v49 = vpack.c.bf16 %v283_v40, %v282_v39 }
  0x74   :  { %564 = vmatprep.mubr.f32.mxu1 %v101_v3  ;;  %1930 = vmatpush3.bf16.msra.mxu1 %v1929_v5  ;;  %v123_v47 = vld [vmem:[#allocation2 + $0x148] sm:$0xff]  ;;  %v125_v48 = vld [vmem:[#allocation2 + $0x158] sm:$0xff]  ;;  %v1941_v51 = vpack.c.bf16 %v315_v43, %v314_v42  ;;  %v284_v53 = vld [vmem:[#allocation5 + $0x250] sm:$0xff] }
  0x75   :  { %420 = vmatmul.mubr.f32.gmra.mrb[4].mxu0 %v98_v14  ;;  %1932 = vmatprep.subr.bf16.mxu1 %v1931_v10  ;;  %v301_v50 = vld [vmem:[#allocation5 + $0x2d8] sm:$0xff]  ;;  %v332_v55 = vld [vmem:[#allocation5 + $0x3d0] sm:$0xff]  ;;  %v122_v58 = vld [vmem:[#allocation2 + $0x140] sm:$0xff] }
  0x76   :  { %424 = vmatprep.mubr.f32.mxu0 %v107_v18  ;;  %1902 = vmatpush3.bf16.msra.mxu0 %v1901_v20  ;;  %v1911_v52 = vpack.c.bf16 %v301_v50, %v300_v46  ;;  %v285_v54 = vld [vmem:[#allocation5 + $0x258] sm:$0xff]  ;;  %v316_v57 = vld [vmem:[#allocation5 + $0x350] sm:$0xff]  ;;  %v131_v62 = vld [vmem:[#allocation2 + $0x188] sm:$0xff] }
  0x77   :  { %565 = vmatmul.mubr.f32.gmra.mrb[4].mxu1 %v100_v17  ;;  %1904 = vmatprep.subr.bf16.mxu0 %v1903_v22  ;;  %v333_v56 = vld [vmem:[#allocation5 + $0x3d8] sm:$0xff]  ;;  %v124_v61 = vld [vmem:[#allocation2 + $0x150] sm:$0xff]  ;;  %v1913_v63 = vpack.c.bf16 %v285_v54, %v284_v53  ;;  %v302_v2 = vld [vmem:[#allocation5 + $0x2e0] sm:$0xff] }
  0x78   :  { %569 = vmatprep.mubr.f32.mxu1 %v109_v19  ;;  %1934 = vmatpush3.bf16.msra.mxu1 %v1933_v21  ;;  %v1943_v59 = vpack.c.bf16 %v333_v56, %v332_v55  ;;  %v317_v60 = vld [vmem:[#allocation5 + $0x358] sm:$0xff]  ;;  %v303_v3 = vld [vmem:[#allocation5 + $0x2e8] sm:$0xff]  ;;  %v130_v4 = vld [vmem:[#allocation2 + $0x180] sm:$0xff] }
  0x79   :  { %425 = vmatmul.mubr.f32.gmra.mrb[6].mxu0 %v106_v30  ;;  %1936 = vmatprep.subr.bf16.mxu1 %v1935_v26  ;;  %v133_v0 = vld [vmem:[#allocation2 + $0x198] sm:$0xff]  ;;  %v1945_v1 = vpack.c.bf16 %v317_v60, %v316_v57  ;;  %v1915_v5 = vpack.c.bf16 %v303_v3, %v302_v2  ;;  %v286_v6 = vld [vmem:[#allocation5 + $0x260] sm:$0xff]  ;;  %v287_v7 = vld [vmem:[#allocation5 + $0x268] sm:$0xff] }
  0x7a   :  { %429 = vmatprep.mubr.f32.mxu0 %v115_v32  ;;  %1906 = vmatpush3.bf16.msra.mxu0 %v1905_v33  ;;  %v132_v8 = vld [vmem:[#allocation2 + $0x190] sm:$0xff]  ;;  %v334_v9 = vld [vmem:[#allocation5 + $0x3e0] sm:$0xff]  ;;  %v335_v10 = vld [vmem:[#allocation5 + $0x3e8] sm:$0xff]  ;;  %v1917_v12 = vpack.c.bf16 %v287_v7, %v286_v6 }
  0x7b   :  { %570 = vmatmul.mubr.f32.gmra.mrb[6].mxu1 %v108_v31  ;;  %1908 = vmatprep.subr.bf16.mxu0 %v1907_v38  ;;  %v139_v11 = vld [vmem:[#allocation2 + $0x1c8] sm:$0xff]  ;;  %v1947_v13 = vpack.c.bf16 %v335_v10, %v334_v9  ;;  %v318_v14 = vld [vmem:[#allocation5 + $0x360] sm:$0xff]  ;;  %v141_v16 = vld [vmem:[#allocation2 + $0x1d8] sm:$0xff] }
  0x7c   :  { %574 = vmatprep.mubr.f32.mxu1 %v117_v36  ;;  %1938 = vmatpush3.bf16.msra.mxu1 %v1937_v37  ;;  %v319_v15 = vld [vmem:[#allocation5 + $0x368] sm:$0xff]  ;;  %v138_v18 = vld [vmem:[#allocation2 + $0x1c0] sm:$0xff]  ;;  %v304_v19 = vld [vmem:[#allocation5 + $0x2f0] sm:$0xff] }
  0x7d   :  { %430 = vmatmul.mubr.f32.gmra.mrb[8].mxu0 %v114_v44  ;;  %1940 = vmatprep.subr.bf16.mxu1 %v1939_v41  ;;  %v1949_v17 = vpack.c.bf16 %v319_v15, %v318_v14  ;;  %v305_v20 = vld [vmem:[#allocation5 + $0x2f8] sm:$0xff]  ;;  %v140_v21 = vld [vmem:[#allocation2 + $0x1d0] sm:$0xff]  ;;  %v147_v25 = vld [vmem:[#allocation2 + $0x208] sm:$0xff] }
  0x7e   :  { %434 = vmatprep.mubr.f32.mxu0 %v123_v47  ;;  %1910 = vmatpush3.bf16.msra.mxu0 %v1909_v49  ;;  %v1919_v22 = vpack.c.bf16 %v305_v20, %v304_v19  ;;  %v288_v23 = vld [vmem:[#allocation5 + $0x270] sm:$0xff]  ;;  %v289_v24 = vld [vmem:[#allocation5 + $0x278] sm:$0xff]  ;;  %v146_v34 = vld [vmem:[#allocation2 + $0x200] sm:$0xff] }
  0x7f   :  { %575 = vmatmul.mubr.f32.gmra.mrb[8].mxu1 %v116_v45  ;;  %1912 = vmatprep.subr.bf16.mxu0 %v1911_v52  ;;  %v1921_v26 = vpack.c.bf16 %v289_v24, %v288_v23  ;;  %v336_v27 = vld [vmem:[#allocation5 + $0x3f0] sm:$0xff]  ;;  %v337_v28 = vld [vmem:[#allocation5 + $0x3f8] sm:$0xff]  ;;  %v155_v36 = vld [vmem:[#allocation2 + $0x248] sm:$0xff] }
  0x80   :  { %579 = vmatprep.mubr.f32.mxu1 %v125_v48  ;;  %1942 = vmatpush3.bf16.msra.mxu1 %v1941_v51  ;;  %v149_v29 = vld [vmem:[#allocation2 + $0x218] sm:$0xff]  ;;  %v1951_v30 = vpack.c.bf16 %v337_v28, %v336_v27  ;;  %v320_v31 = vld [vmem:[#allocation5 + $0x370] sm:$0xff]  ;;  %v154_v38 = vld [vmem:[#allocation2 + $0x240] sm:$0xff] }
  0x81   :  { %435 = vmatmul.mubr.f32.gmra.mrb[10].mxu0 %v122_v58  ;;  %1944 = vmatprep.subr.bf16.mxu1 %v1943_v59  ;;  %v321_v32 = vld [vmem:[#allocation5 + $0x378] sm:$0xff]  ;;  %v148_v35 = vld [vmem:[#allocation2 + $0x210] sm:$0xff]  ;;  %v163_v40 = vld [vmem:[#allocation2 + $0x288] sm:$0xff] }
  0x82   :  { %439 = vmatprep.mubr.f32.mxu0 %v131_v62  ;;  %1914 = vmatpush3.bf16.msra.mxu0 %v1913_v63  ;;  %v1953_v33 = vpack.c.bf16 %v321_v32, %v320_v31  ;;  %v157_v37 = vld [vmem:[#allocation2 + $0x258] sm:$0xff]  ;;  %v156_v39 = vld [vmem:[#allocation2 + $0x250] sm:$0xff]  ;;  %v162_v42 = vld [vmem:[#allocation2 + $0x280] sm:$0xff] }
  0x83   :  { %580 = vmatmul.mubr.f32.gmra.mrb[10].mxu1 %v124_v61  ;;  %1916 = vmatprep.subr.bf16.mxu0 %v1915_v5  ;;  %v165_v41 = vld [vmem:[#allocation2 + $0x298] sm:$0xff]  ;;  %v164_v43 = vld [vmem:[#allocation2 + $0x290] sm:$0xff]  ;;  %v171_v44 = vld [vmem:[#allocation2 + $0x2c8] sm:$0xff] }
  0x84   :  { %584 = vmatprep.mubr.f32.mxu1 %v133_v0  ;;  %1946 = vmatpush3.bf16.msra.mxu1 %v1945_v1  ;;  %v173_v45 = vld [vmem:[#allocation2 + $0x2d8] sm:$0xff]  ;;  %v170_v46 = vld [vmem:[#allocation2 + $0x2c0] sm:$0xff]  ;;  %v172_v47 = vld [vmem:[#allocation2 + $0x2d0] sm:$0xff] }
  0x85   :  { %440 = vmatmul.mubr.f32.gmra.mrb[12].mxu0 %v130_v4  ;;  %1948 = vmatprep.subr.bf16.mxu1 %v1947_v13  ;;  %v179_v48 = vld [vmem:[#allocation2 + $0x308] sm:$0xff]  ;;  %v181_v49 = vld [vmem:[#allocation2 + $0x318] sm:$0xff]  ;;  %v178_v50 = vld [vmem:[#allocation2 + $0x300] sm:$0xff] }
  0x86   :  { %444 = vmatprep.mubr.f32.mxu0 %v139_v11  ;;  %1918 = vmatpush3.bf16.msra.mxu0 %v1917_v12  ;;  %v180_v51 = vld [vmem:[#allocation2 + $0x310] sm:$0xff]  ;;  %v187_v52 = vld [vmem:[#allocation2 + $0x348] sm:$0xff]  ;;  %v189_v53 = vld [vmem:[#allocation2 + $0x358] sm:$0xff] }
  0x87   :  { %585 = vmatmul.mubr.f32.gmra.mrb[12].mxu1 %v132_v8  ;;  %1920 = vmatprep.subr.bf16.mxu0 %v1919_v22  ;;  %v186_v54 = vld [vmem:[#allocation2 + $0x340] sm:$0xff]  ;;  %v188_v55 = vld [vmem:[#allocation2 + $0x350] sm:$0xff]  ;;  %v195_v56 = vld [vmem:[#allocation2 + $0x388] sm:$0xff] }
  0x88   :  { %589 = vmatprep.mubr.f32.mxu1 %v141_v16  ;;  %1950 = vmatpush3.bf16.msra.mxu1 %v1949_v17  ;;  %v197_v57 = vld [vmem:[#allocation2 + $0x398] sm:$0xff]  ;;  %v194_v58 = vld [vmem:[#allocation2 + $0x380] sm:$0xff]  ;;  %v196_v59 = vld [vmem:[#allocation2 + $0x390] sm:$0xff] }
  0x89   :  { %445 = vmatmul.mubr.f32.gmra.mrb[14].mxu0 %v138_v18  ;;  %1952 = vmatprep.subr.bf16.mxu1 %v1951_v30  ;;  %v203_v60 = vld [vmem:[#allocation2 + $0x3c8] sm:$0xff]  ;;  %v205_v61 = vld [vmem:[#allocation2 + $0x3d8] sm:$0xff]  ;;  %v202_v62 = vld [vmem:[#allocation2 + $0x3c0] sm:$0xff] }
  0x8a   :  { %449 = vmatprep.mubr.f32.mxu0 %v147_v25  ;;  %1922 = vmatpush3.bf16.msra.mxu0 %v1921_v26  ;;  %v204_v63 = vld [vmem:[#allocation2 + $0x3d0] sm:$0xff]  ;;  %v87_v0 = vld [vmem:[#allocation2 + $0x28] sm:$0xff]  ;;  %v89_v1 = vld [vmem:[#allocation2 + $0x38] sm:$0xff] }
  0x8b   :  { %590 = vmatmul.mubr.f32.gmra.mrb[14].mxu1 %v140_v21  ;;  %v86_v2 = vld [vmem:[#allocation2 + $0x20] sm:$0xff]  ;;  %v88_v3 = vld [vmem:[#allocation2 + $0x30] sm:$0xff]  ;;  %v95_v4 = vld [vmem:[#allocation2 + $0x68] sm:$0xff] }
  0x8c   :  { %594 = vmatprep.mubr.f32.mxu1 %v149_v29  ;;  %1954 = vmatpush3.bf16.msra.mxu1 %v1953_v33  ;;  %v97_v5 = vld [vmem:[#allocation2 + $0x78] sm:$0xff]  ;;  %v94_v6 = vld [vmem:[#allocation2 + $0x60] sm:$0xff]  ;;  %v96_v7 = vld [vmem:[#allocation2 + $0x70] sm:$0xff] }
  0x8d   :  { %450 = vmatmul.mubr.f32.gmra.mrb[16].mxu0 %v146_v34  ;;  %v103_v8 = vld [vmem:[#allocation2 + $0xa8] sm:$0xff]  ;;  %v105_v9 = vld [vmem:[#allocation2 + $0xb8] sm:$0xff]  ;;  %v102_v10 = vld [vmem:[#allocation2 + $0xa0] sm:$0xff] }
  0x8e   :  { %454 = vmatprep.mubr.f32.mxu0 %v155_v36  ;;  %v104_v11 = vld [vmem:[#allocation2 + $0xb0] sm:$0xff]  ;;  %v111_v12 = vld [vmem:[#allocation2 + $0xe8] sm:$0xff]  ;;  %v113_v13 = vld [vmem:[#allocation2 + $0xf8] sm:$0xff] }
  0x8f   :  { %595 = vmatmul.mubr.f32.gmra.mrb[16].mxu1 %v148_v35  ;;  %v110_v14 = vld [vmem:[#allocation2 + $0xe0] sm:$0xff]  ;;  %v112_v15 = vld [vmem:[#allocation2 + $0xf0] sm:$0xff]  ;;  %v119_v16 = vld [vmem:[#allocation2 + $0x128] sm:$0xff] }
  0x90   :  { %599 = vmatprep.mubr.f32.mxu1 %v157_v37  ;;  %v121_v17 = vld [vmem:[#allocation2 + $0x138] sm:$0xff]  ;;  %v118_v18 = vld [vmem:[#allocation2 + $0x120] sm:$0xff]  ;;  %v120_v19 = vld [vmem:[#allocation2 + $0x130] sm:$0xff] }
  0x91   :  { %455 = vmatmul.mubr.f32.gmra.mrb[18].mxu0 %v154_v38  ;;  %v127_v20 = vld [vmem:[#allocation2 + $0x168] sm:$0xff]  ;;  %v129_v21 = vld [vmem:[#allocation2 + $0x178] sm:$0xff]  ;;  %v126_v22 = vld [vmem:[#allocation2 + $0x160] sm:$0xff] }
  0x92   :  { %459 = vmatprep.mubr.f32.mxu0 %v163_v40  ;;  %v128_v23 = vld [vmem:[#allocation2 + $0x170] sm:$0xff]  ;;  %v135_v24 = vld [vmem:[#allocation2 + $0x1a8] sm:$0xff]  ;;  %v137_v25 = vld [vmem:[#allocation2 + $0x1b8] sm:$0xff] }
  0x93   :  { %600 = vmatmul.mubr.f32.gmra.mrb[18].mxu1 %v156_v39  ;;  %v134_v26 = vld [vmem:[#allocation2 + $0x1a0] sm:$0xff]  ;;  %v136_v27 = vld [vmem:[#allocation2 + $0x1b0] sm:$0xff]  ;;  %v143_v28 = vld [vmem:[#allocation2 + $0x1e8] sm:$0xff] }
  0x94   :  { %604 = vmatprep.mubr.f32.mxu1 %v165_v41  ;;  %v145_v29 = vld [vmem:[#allocation2 + $0x1f8] sm:$0xff]  ;;  %v142_v30 = vld [vmem:[#allocation2 + $0x1e0] sm:$0xff]  ;;  %v144_v31 = vld [vmem:[#allocation2 + $0x1f0] sm:$0xff] }
  0x95   :  { %460 = vmatmul.mubr.f32.gmra.mrb[20].mxu0 %v162_v42  ;;  %v151_v32 = vld [vmem:[#allocation2 + $0x228] sm:$0xff]  ;;  %v153_v33 = vld [vmem:[#allocation2 + $0x238] sm:$0xff]  ;;  %v150_v34 = vld [vmem:[#allocation2 + $0x220] sm:$0xff] }
  0x96   :  { %464 = vmatprep.mubr.f32.mxu0 %v171_v44  ;;  %v152_v35 = vld [vmem:[#allocation2 + $0x230] sm:$0xff]  ;;  %v159_v36 = vld [vmem:[#allocation2 + $0x268] sm:$0xff]  ;;  %v161_v37 = vld [vmem:[#allocation2 + $0x278] sm:$0xff] }
  0x97   :  { %605 = vmatmul.mubr.f32.gmra.mrb[20].mxu1 %v164_v43  ;;  %v158_v38 = vld [vmem:[#allocation2 + $0x260] sm:$0xff]  ;;  %v160_v39 = vld [vmem:[#allocation2 + $0x270] sm:$0xff]  ;;  %v167_v40 = vld [vmem:[#allocation2 + $0x2a8] sm:$0xff] }
  0x98   :  { %609 = vmatprep.mubr.f32.mxu1 %v173_v45  ;;  %v169_v41 = vld [vmem:[#allocation2 + $0x2b8] sm:$0xff]  ;;  %v166_v42 = vld [vmem:[#allocation2 + $0x2a0] sm:$0xff]  ;;  %v168_v43 = vld [vmem:[#allocation2 + $0x2b0] sm:$0xff] }
  0x99   :  { %465 = vmatmul.mubr.f32.gmra.mrb[22].mxu0 %v170_v46  ;;  %v175_v44 = vld [vmem:[#allocation2 + $0x2e8] sm:$0xff]  ;;  %v177_v45 = vld [vmem:[#allocation2 + $0x2f8] sm:$0xff]  ;;  %v174_v46 = vld [vmem:[#allocation2 + $0x2e0] sm:$0xff] }
  0x9a   :  { %469 = vmatprep.mubr.f32.mxu0 %v179_v48  ;;  %v183_v48 = vld [vmem:[#allocation2 + $0x328] sm:$0xff] }
  0x9b   :  { %610 = vmatmul.mubr.f32.gmra.mrb[22].mxu1 %v172_v47  ;;  %v176_v47 = vld [vmem:[#allocation2 + $0x2f0] sm:$0xff] }
  0x9c   :  { %614 = vmatprep.mubr.f32.mxu1 %v181_v49  ;;  %v185_v49 = vld [vmem:[#allocation2 + $0x338] sm:$0xff] }
  0x9d   :  { %470 = vmatmul.mubr.f32.gmra.mrb[24].mxu0 %v178_v50  ;;  %v182_v50 = vld [vmem:[#allocation2 + $0x320] sm:$0xff] }
  0x9e   :  { %474 = vmatprep.mubr.f32.mxu0 %v187_v52  ;;  %v191_v52 = vld [vmem:[#allocation2 + $0x368] sm:$0xff] }
  0x9f   :  { %615 = vmatmul.mubr.f32.gmra.mrb[24].mxu1 %v180_v51  ;;  %v184_v51 = vld [vmem:[#allocation2 + $0x330] sm:$0xff] }
  0xa0   :  { %619 = vmatprep.mubr.f32.mxu1 %v189_v53  ;;  %v193_v53 = vld [vmem:[#allocation2 + $0x378] sm:$0xff] }
  0xa1   :  { %475 = vmatmul.mubr.f32.gmra.mrb[26].mxu0 %v186_v54  ;;  %v190_v54 = vld [vmem:[#allocation2 + $0x360] sm:$0xff] }
  0xa2   :  { %479 = vmatprep.mubr.f32.mxu0 %v195_v56  ;;  %v199_v56 = vld [vmem:[#allocation2 + $0x3a8] sm:$0xff] }
  0xa3   :  { %620 = vmatmul.mubr.f32.gmra.mrb[26].mxu1 %v188_v55  ;;  %v192_v55 = vld [vmem:[#allocation2 + $0x370] sm:$0xff] }
  0xa4   :  { %624 = vmatprep.mubr.f32.mxu1 %v197_v57  ;;  %v201_v57 = vld [vmem:[#allocation2 + $0x3b8] sm:$0xff] }
  0xa5   :  { %480 = vmatmul.mubr.f32.gmra.mrb[28].mxu0 %v194_v58  ;;  %v198_v58 = vld [vmem:[#allocation2 + $0x3a0] sm:$0xff] }
  0xa6   :  { %484 = vmatprep.mubr.f32.mxu0 %v203_v60  ;;  %v207_v60 = vld [vmem:[#allocation2 + $0x3e8] sm:$0xff] }
  0xa7   :  { %625 = vmatmul.mubr.f32.gmra.mrb[28].mxu1 %v196_v59  ;;  %v200_v59 = vld [vmem:[#allocation2 + $0x3b0] sm:$0xff] }
  0xa8   :  { %629 = vmatprep.mubr.f32.mxu1 %v205_v61  ;;  %v209_v61 = vld [vmem:[#allocation2 + $0x3f8] sm:$0xff] }
  0xa9   :  { %485 = vmatmul.mubr.f32.gmra.mrb[30].mxu0 %v202_v62  ;;  %v206_v62 = vld [vmem:[#allocation2 + $0x3e0] sm:$0xff] }
  0xaa   :  { %699 = vmatprep.mubr.f32.mxu0 %v87_v0  ;;  %v941_v0 = vld [vmem:[#allocation7] sm:$0xff] }
  0xab   :  { %630 = vmatmul.mubr.f32.gmra.mrb[30].mxu1 %v204_v63  ;;  %v208_v63 = vld [vmem:[#allocation2 + $0x3f0] sm:$0xff] }
  0xac   :  { %844 = vmatprep.mubr.f32.mxu1 %v89_v1  ;;  %v942_v1 = vld [vmem:[#allocation7 + $0x8] sm:$0xff] }
  0xad   :  { %700 = vmatmul.mubr.f32.vlgmr.msra.gmra.mrb[32].mxu0 %v86_v2  ;;  %v1955_v2 = vpack.c.bf16 %v942_v1, %v941_v0 }
  0xae   :  { %704 = vmatprep.mubr.f32.mxu0 %v95_v4  ;;  %v944_v4 = vld [vmem:[#allocation7 + $0x18] sm:$0xff] }
  0xaf   :  { %845 = vmatmul.mubr.f32.vlgmr.msra.gmra.mrb[32].mxu1 %v88_v3  ;;  %1956 = vmatprep.subr.bf16.mxu0 %v1955_v2  ;;  %v943_v3 = vld [vmem:[#allocation7 + $0x10] sm:$0xff] }
  0xb0   :  { %849 = vmatprep.mubr.f32.mxu1 %v97_v5  ;;  %1958 = vmatpush3.bf16.msra.mxu0 %v1955_v2  ;;  %v1959_v5 = vpack.c.bf16 %v944_v4, %v943_v3 }
  0xb1   :  { %705 = vmatmul.mubr.f32.gmra.mrb[34].mxu0 %v94_v6  ;;  %v945_v6 = vld [vmem:[#allocation7 + $0x20] sm:$0xff] }
  0xb2   :  { %709 = vmatprep.mubr.f32.mxu0 %v103_v8  ;;  %1960 = vmatprep.subr.bf16.mxu0 %v1959_v5 }
  0xb3   :  { %850 = vmatmul.mubr.f32.gmra.mrb[34].mxu1 %v96_v7  ;;  %v946_v7 = vld [vmem:[#allocation7 + $0x28] sm:$0xff] }
  0xb4   :  { %854 = vmatprep.mubr.f32.mxu1 %v105_v9  ;;  %1962 = vmatpush3.bf16.msra.mxu0 %v1959_v5  ;;  %v1963_v8 = vpack.c.bf16 %v946_v7, %v945_v6  ;;  %v947_v9 = vld [vmem:[#allocation7 + $0x30] sm:$0xff]  ;;  %v1133_v5 = vld [vmem:[#allocation8 + $0x40] sm:$0xff]  ;;  %v1134_v6 = vld [vmem:[#allocation8 + $0x48] sm:$0xff] }
  0xb5   :  { %710 = vmatmul.mubr.f32.gmra.mrb[36].mxu0 %v102_v10  ;;  %v948_v10 = vld [vmem:[#allocation7 + $0x38] sm:$0xff] }
  0xb6   :  { %714 = vmatprep.mubr.f32.mxu0 %v111_v12  ;;  %1964 = vmatprep.subr.bf16.mxu0 %v1963_v8  ;;  %v949_v12 = vld [vmem:[#allocation7 + $0x40] sm:$0xff] }
  0xb7   :  { %855 = vmatmul.mubr.f32.gmra.mrb[36].mxu1 %v104_v11  ;;  %v1967_v11 = vpack.c.bf16 %v948_v10, %v947_v9 }
  0xb8   :  { %859 = vmatprep.mubr.f32.mxu1 %v113_v13  ;;  %1966 = vmatpush3.bf16.msra.mxu0 %v1963_v8  ;;  %v950_v13 = vld [vmem:[#allocation7 + $0x48] sm:$0xff] }
  0xb9   :  { %715 = vmatmul.mubr.f32.gmra.mrb[38].mxu0 %v110_v14  ;;  %1968 = vmatprep.subr.bf16.mxu0 %v1967_v11  ;;  %v1971_v14 = vpack.c.bf16 %v950_v13, %v949_v12  ;;  %v2003_v13 = vpack.c.bf16 %v1134_v6, %v1133_v5 }
  0xba   :  { %719 = vmatprep.mubr.f32.mxu0 %v119_v16  ;;  %v952_v16 = vld [vmem:[#allocation7 + $0x58] sm:$0xff] }
  0xbb   :  { %860 = vmatmul.mubr.f32.gmra.mrb[38].mxu1 %v112_v15  ;;  %v951_v15 = vld [vmem:[#allocation7 + $0x50] sm:$0xff] }
  0xbc   :  { %864 = vmatprep.mubr.f32.mxu1 %v121_v17  ;;  %1970 = vmatpush3.bf16.msra.mxu0 %v1967_v11  ;;  %v1975_v17 = vpack.c.bf16 %v952_v16, %v951_v15  ;;  %v1135_v16 = vld [vmem:[#allocation8 + $0x50] sm:$0xff] }
  0xbd   :  { %720 = vmatmul.mubr.f32.gmra.mrb[40].mxu0 %v118_v18  ;;  %1972 = vmatprep.subr.bf16.mxu0 %v1971_v14  ;;  %v953_v18 = vld [vmem:[#allocation7 + $0x60] sm:$0xff] }
  0xbe   :  { %724 = vmatprep.mubr.f32.mxu0 %v127_v20 }
  0xbf   :  { %865 = vmatmul.mubr.f32.gmra.mrb[40].mxu1 %v120_v19  ;;  %v954_v19 = vld [vmem:[#allocation7 + $0x68] sm:$0xff] }
  0xc0   :  { %869 = vmatprep.mubr.f32.mxu1 %v129_v21  ;;  %1974 = vmatpush3.bf16.msra.mxu0 %v1971_v14  ;;  %v1979_v20 = vpack.c.bf16 %v954_v19, %v953_v18  ;;  %v955_v21 = vld [vmem:[#allocation7 + $0x70] sm:$0xff] }
  0xc1   :  { %725 = vmatmul.mubr.f32.gmra.mrb[42].mxu0 %v126_v22  ;;  %1976 = vmatprep.subr.bf16.mxu0 %v1975_v17  ;;  %v956_v22 = vld [vmem:[#allocation7 + $0x78] sm:$0xff] }
  0xc2   :  { %729 = vmatprep.mubr.f32.mxu0 %v135_v24 }
  0xc3   :  { %870 = vmatmul.mubr.f32.gmra.mrb[42].mxu1 %v128_v23  ;;  %v1983_v23 = vpack.c.bf16 %v956_v22, %v955_v21 }
  0xc4   :  { %874 = vmatprep.mubr.f32.mxu1 %v137_v25  ;;  %1978 = vmatpush3.bf16.msra.mxu0 %v1975_v17  ;;  %v2262_v25 = vld [vmem:[%s2351_s2] ss:$0 sm:$0xff]  ;;  %v1136_v17 = vld [vmem:[#allocation8 + $0x58] sm:$0xff] }
  0xc5   :  { %730 = vmatmul.mubr.f32.gmra.mrb[44].mxu0 %v134_v26  ;;  %1980 = vmatprep.subr.bf16.mxu0 %v1979_v20 }
  0xc6   :  { %734 = vmatprep.mubr.f32.mxu0 %v143_v28 }
  0xc7   :  { %875 = vmatmul.mubr.f32.gmra.mrb[44].mxu1 %v136_v27 }
  0xc8   :  { %879 = vmatprep.mubr.f32.mxu1 %v145_v29  ;;  %1982 = vmatpush3.bf16.msra.mxu0 %v1979_v20 }
  0xc9   :  { %735 = vmatmul.mubr.f32.gmra.mrb[46].mxu0 %v142_v30  ;;  %1984 = vmatprep.subr.bf16.mxu0 %v1983_v23 }
  0xca   :  { %739 = vmatprep.mubr.f32.mxu0 %v151_v32 }
  0xcb   :  { %880 = vmatmul.mubr.f32.gmra.mrb[46].mxu1 %v144_v31 }
  0xcc   :  { %884 = vmatprep.mubr.f32.mxu1 %v153_v33  ;;  %1986 = vmatpush3.bf16.msra.mxu0 %v1983_v23 }
  0xcd   :  { %740 = vmatmul.mubr.f32.gmra.mrb[48].mxu0 %v150_v34 }
  0xce   :  { %744 = vmatprep.mubr.f32.mxu0 %v159_v36 }
  0xcf   :  { %885 = vmatmul.mubr.f32.gmra.mrb[48].mxu1 %v152_v35 }
  0xd0   :  { %889 = vmatprep.mubr.f32.mxu1 %v161_v37 }
  0xd1   :  { %745 = vmatmul.mubr.f32.gmra.mrb[50].mxu0 %v158_v38  ;;  %v1125_v38 = vld [vmem:[#allocation8] sm:$0xff] }
  0xd2   :  { %749 = vmatprep.mubr.f32.mxu0 %v167_v40  ;;  %v1127_v40 = vld [vmem:[#allocation8 + $0x10] sm:$0xff] }
  0xd3   :  { %890 = vmatmul.mubr.f32.gmra.mrb[50].mxu1 %v160_v39  ;;  %v1126_v39 = vld [vmem:[#allocation8 + $0x8] sm:$0xff] }
  0xd4   :  { %894 = vmatprep.mubr.f32.mxu1 %v169_v41 }
  0xd5   :  { %750 = vmatmul.mubr.f32.gmra.mrb[52].mxu0 %v166_v42  ;;  %v1987_v42 = vpack.c.bf16 %v1126_v39, %v1125_v38 }
  0xd6   :  { %754 = vmatprep.mubr.f32.mxu0 %v175_v44 }
  0xd7   :  { %895 = vmatmul.mubr.f32.gmra.mrb[52].mxu1 %v168_v43  ;;  %v1128_v43 = vld [vmem:[#allocation8 + $0x18] sm:$0xff]  ;;  %1988 = vmatprep.subr.bf16.mxu1 %v1987_v42 }
  0xd8   :  { %899 = vmatprep.mubr.f32.mxu1 %v177_v45  ;;  %1990 = vmatpush3.bf16.msra.mxu1 %v1987_v42 }
  0xd9   :  { %755 = vmatmul.mubr.f32.gmra.mrb[54].mxu0 %v174_v46  ;;  %v1991_v46 = vpack.c.bf16 %v1128_v43, %v1127_v40 }
  0xda   :  { %759 = vmatprep.mubr.f32.mxu0 %v183_v48  ;;  %v1130_v48 = vld [vmem:[#allocation8 + $0x28] sm:$0xff] }
  0xdb   :  { %900 = vmatmul.mubr.f32.gmra.mrb[54].mxu1 %v176_v47  ;;  %v1129_v47 = vld [vmem:[#allocation8 + $0x20] sm:$0xff]  ;;  %1992 = vmatprep.subr.bf16.mxu1 %v1991_v46 }
  0xdc   :  { %904 = vmatprep.mubr.f32.mxu1 %v185_v49  ;;  %1994 = vmatpush3.bf16.msra.mxu1 %v1991_v46 }
  0xdd   :  { %760 = vmatmul.mubr.f32.gmra.mrb[56].mxu0 %v182_v50 }
  0xde   :  { %764 = vmatprep.mubr.f32.mxu0 %v191_v52 }
  0xdf   :  { %905 = vmatmul.mubr.f32.gmra.mrb[56].mxu1 %v184_v51 }
  0xe0   :  { %909 = vmatprep.mubr.f32.mxu1 %v193_v53 }
  0xe1   :  { %765 = vmatmul.mubr.f32.gmra.mrb[58].mxu0 %v190_v54 }
  0xe2   :  { %769 = vmatprep.mubr.f32.mxu0 %v199_v56 }
  0xe3   :  { %910 = vmatmul.mubr.f32.gmra.mrb[58].mxu1 %v192_v55  ;;  %v1995_v55 = vpack.c.bf16 %v1130_v48, %v1129_v47 }
  0xe4   :  { %914 = vmatprep.mubr.f32.mxu1 %v201_v57 }
  0xe5   :  { %770 = vmatmul.mubr.f32.gmra.mrb[60].mxu0 %v198_v58  ;;  %v1131_v58 = vld [vmem:[#allocation8 + $0x30] sm:$0xff]  ;;  %1996 = vmatprep.subr.bf16.mxu1 %v1995_v55 }
  0xe6   :  { %774 = vmatprep.mubr.f32.mxu0 %v207_v60  ;;  %1998 = vmatpush3.bf16.msra.mxu1 %v1995_v55 }
  0xe7   :  { %915 = vmatmul.mubr.f32.gmra.mrb[60].mxu1 %v200_v59  ;;  %v1132_v59 = vld [vmem:[#allocation8 + $0x38] sm:$0xff] }
  0xe8   :  { %919 = vmatprep.mubr.f32.mxu1 %v209_v61  ;;  %v1999_v2 = vpack.c.bf16 %v1132_v59, %v1131_v58 }
  0xe9   :  { %775 = vmatmul.mubr.f32.gmra.mrb[62].mxu0 %v206_v62 }
  0xea   :  { %2000 = vmatprep.subr.bf16.mxu1 %v1999_v2 }
  0xeb   :  { %920 = vmatmul.mubr.f32.gmra.mrb[62].mxu1 %v208_v63 }
  0xec   :  { %2002 = vmatpush3.bf16.msra.mxu1 %v1999_v2 }
  0xed   :  { %2004 = vmatprep.subr.bf16.mxu1 %v2003_v13 }
  0xf0   :  { %2006 = vmatpush3.bf16.msra.mxu1 %v2003_v13 }
 0x140   :  { %v1363_v24 = vpop.f32.mrb[0].mxu0 }
 0x141   :  { %v1364_v26 = vpop.f32.mrb[1].mxu0 }
 0x142   :  { %v1443_v27 = vpop.f32.mrb[0].mxu1  ;;  %v1365_v28 = vadd.f32 %v1364_v26, %v1363_v24  ;;  %v2007_v24 = vpack.c.bf16 %v1136_v17, %v1135_v16 }
 0x143   :  { %v1444_v29 = vpop.f32.mrb[1].mxu1 }
 0x144   :  { %v1445_v30 = vadd.f32 %v1444_v29, %v1443_v27  ;;  %v412_v31 = vadd.f32 %v1365_v28, %v2262_v25  ;;  %v1366_v32 = vpop.f32.mrb[2].mxu0  ;;  %v1137_v28 = vld [vmem:[#allocation8 + $0x60] sm:$0xff]  ;;  %v1138_v29 = vld [vmem:[#allocation8 + $0x68] sm:$0xff]  ;;  %2008 = vmatprep.subr.bf16.mxu1 %v2007_v24 }
 0x145   :  { %v1367_v33 = vpop.f32.mrb[3].mxu0  ;;  %2010 = vmatpush3.bf16.msra.mxu1 %v2007_v24 }
 0x146   :  { %v1446_v34 = vpop.f32.mrb[2].mxu1  ;;  %v2265_v35 = vadd.f32 %v1445_v30, %v412_v31  ;;  %v1368_v36 = vadd.f32 %v1367_v33, %v1366_v32 }
 0x147   :  { %v1447_v37 = vpop.f32.mrb[3].mxu1 }
 0x148   :  { %v1448_v41 = vadd.f32 %v1447_v37, %v1446_v34  ;;  %v417_v44 = vadd.f32 %v1368_v36, %v2262_v25  ;;  %v1369_v45 = vpop.f32.mrb[4].mxu0  ;;  %v2011_v37 = vpack.c.bf16 %v1138_v29, %v1137_v28 }
 0x149   :  { %v1370_v49 = vpop.f32.mrb[5].mxu0 }
 0x14a   :  { %v1449_v50 = vpop.f32.mrb[4].mxu1  ;;  %v2268_v51 = vadd.f32 %v1448_v41, %v417_v44  ;;  %v1371_v52 = vadd.f32 %v1370_v49, %v1369_v45  ;;  %2012 = vmatprep.subr.bf16.mxu1 %v2011_v37 }
 0x14b   :  { %v1450_v53 = vpop.f32.mrb[5].mxu1  ;;  %2014 = vmatpush3.bf16.msra.mxu1 %v2011_v37 }
 0x14c   :  { %v1451_v54 = vadd.f32 %v1450_v53, %v1449_v50  ;;  %v422_v56 = vadd.f32 %v1371_v52, %v2262_v25  ;;  %v1372_v57 = vpop.f32.mrb[6].mxu0 }
 0x14d   :  { %v1373_v60 = vpop.f32.mrb[7].mxu0 }
 0x14e   :  { %v1452_v61 = vpop.f32.mrb[6].mxu1  ;;  %v2271_v62 = vadd.f32 %v1451_v54, %v422_v56  ;;  %v1374_v63 = vadd.f32 %v1373_v60, %v1372_v57 }
 0x14f   :  { %v1453_v0 = vpop.f32.mrb[7].mxu1 }
 0x150   :  { %v1454_v1 = vadd.f32 %v1453_v0, %v1452_v61  ;;  %v427_v3 = vadd.f32 %v1374_v63, %v2262_v25  ;;  %v1375_v4 = vpop.f32.mrb[8].mxu0 }
 0x151   :  { %v1376_v7 = vpop.f32.mrb[9].mxu0 }
 0x152   :  { %v1455_v8 = vpop.f32.mrb[8].mxu1  ;;  %v2274_v9 = vadd.f32 %v1454_v1, %v427_v3  ;;  %v1377_v10 = vadd.f32 %v1376_v7, %v1375_v4 }
 0x153   :  { %v1456_v11 = vpop.f32.mrb[9].mxu1 }
 0x154   :  { %v1457_v12 = vadd.f32 %v1456_v11, %v1455_v8  ;;  %v432_v14 = vadd.f32 %v1377_v10, %v2262_v25  ;;  %v1378_v15 = vpop.f32.mrb[10].mxu0 }
 0x155   :  { %v1379_v18 = vpop.f32.mrb[11].mxu0 }
 0x156   :  { %v1458_v19 = vpop.f32.mrb[10].mxu1  ;;  %v2277_v20 = vadd.f32 %v1457_v12, %v432_v14  ;;  %v1380_v21 = vadd.f32 %v1379_v18, %v1378_v15 }
 0x157   :  { %v1459_v22 = vpop.f32.mrb[11].mxu1 }
 0x158   :  { %v1460_v23 = vadd.f32 %v1459_v22, %v1458_v19  ;;  %v437_v26 = vadd.f32 %v1380_v21, %v2262_v25  ;;  %v1381_v27 = vpop.f32.mrb[12].mxu0 }
 0x159   :  { %v1382_v30 = vpop.f32.mrb[13].mxu0 }
 0x15a   :  { %v1461_v31 = vpop.f32.mrb[12].mxu1  ;;  %v2280_v32 = vadd.f32 %v1460_v23, %v437_v26  ;;  %v1383_v33 = vadd.f32 %v1382_v30, %v1381_v27 }
 0x15b   :  { %v1462_v34 = vpop.f32.mrb[13].mxu1 }
 0x15c   :  { %v1463_v36 = vadd.f32 %v1462_v34, %v1461_v31  ;;  %v442_v38 = vadd.f32 %v1383_v33, %v2262_v25  ;;  %v1384_v39 = vpop.f32.mrb[14].mxu0 }
 0x15d   :  { %v1385_v40 = vpop.f32.mrb[15].mxu0 }
 0x15e   :  { %v1464_v41 = vpop.f32.mrb[14].mxu1  ;;  %v2283_v42 = vadd.f32 %v1463_v36, %v442_v38  ;;  %v1386_v43 = vadd.f32 %v1385_v40, %v1384_v39 }
 0x15f   :  { %v1465_v44 = vpop.f32.mrb[15].mxu1 }
 0x160   :  { %v1466_v45 = vadd.f32 %v1465_v44, %v1464_v41  ;;  %v447_v46 = vadd.f32 %v1386_v43, %v2262_v25  ;;  %v1387_v47 = vpop.f32.mrb[16].mxu0 }
 0x161   :  { %v1388_v48 = vpop.f32.mrb[17].mxu0 }
 0x162   :  { %v1467_v49 = vpop.f32.mrb[16].mxu1  ;;  %v2286_v50 = vadd.f32 %v1466_v45, %v447_v46  ;;  %v1389_v52 = vadd.f32 %v1388_v48, %v1387_v47 }
 0x163   :  { %v1468_v53 = vpop.f32.mrb[17].mxu1 }
 0x164   :  { %v1469_v54 = vadd.f32 %v1468_v53, %v1467_v49  ;;  %v452_v55 = vadd.f32 %v1389_v52, %v2262_v25  ;;  %v1390_v56 = vpop.f32.mrb[18].mxu0 }
 0x165   :  { %v1391_v57 = vpop.f32.mrb[19].mxu0 }
 0x166   :  { %v1470_v58 = vpop.f32.mrb[18].mxu1  ;;  %v2289_v59 = vadd.f32 %v1469_v54, %v452_v55  ;;  %v1392_v60 = vadd.f32 %v1391_v57, %v1390_v56 }
 0x167   :  { %v1471_v61 = vpop.f32.mrb[19].mxu1 }
 0x168   :  { %v1472_v63 = vadd.f32 %v1471_v61, %v1470_v58  ;;  %v457_v0 = vadd.f32 %v1392_v60, %v2262_v25  ;;  %v1393_v1 = vpop.f32.mrb[20].mxu0 }
 0x169   :  { %v1394_v2 = vpop.f32.mrb[21].mxu0 }
 0x16a   :  { %v1473_v3 = vpop.f32.mrb[20].mxu1  ;;  %v2292_v4 = vadd.f32 %v1472_v63, %v457_v0  ;;  %v1395_v5 = vadd.f32 %v1394_v2, %v1393_v1 }
 0x16b   :  { %v1474_v6 = vpop.f32.mrb[21].mxu1 }
 0x16c   :  { %v1475_v7 = vadd.f32 %v1474_v6, %v1473_v3  ;;  %v462_v8 = vadd.f32 %v1395_v5, %v2262_v25  ;;  %v1396_v10 = vpop.f32.mrb[22].mxu0 }
 0x16d   :  { %v1397_v11 = vpop.f32.mrb[23].mxu0 }
 0x16e   :  { %v1476_v12 = vpop.f32.mrb[22].mxu1  ;;  %v2295_v13 = vadd.f32 %v1475_v7, %v462_v8  ;;  %v1398_v14 = vadd.f32 %v1397_v11, %v1396_v10 }
 0x16f   :  { %v1477_v15 = vpop.f32.mrb[23].mxu1 }
 0x170   :  { %v1478_v16 = vadd.f32 %v1477_v15, %v1476_v12  ;;  %v467_v17 = vadd.f32 %v1398_v14, %v2262_v25  ;;  %v1399_v18 = vpop.f32.mrb[24].mxu0 }
 0x171   :  { %v1400_v19 = vpop.f32.mrb[25].mxu0 }
 0x172   :  { %v1479_v21 = vpop.f32.mrb[24].mxu1  ;;  %v2298_v22 = vadd.f32 %v1478_v16, %v467_v17  ;;  %v1401_v23 = vadd.f32 %v1400_v19, %v1399_v18 }
 0x173   :  { %v1480_v24 = vpop.f32.mrb[25].mxu1 }
 0x174   :  { %v1481_v26 = vadd.f32 %v1480_v24, %v1479_v21  ;;  %v472_v27 = vadd.f32 %v1401_v23, %v2262_v25  ;;  %v1402_v28 = vpop.f32.mrb[26].mxu0 }
 0x175   :  { %v1403_v29 = vpop.f32.mrb[27].mxu0 }
 0x176   :  { %v1482_v30 = vpop.f32.mrb[26].mxu1  ;;  %v2301_v31 = vadd.f32 %v1481_v26, %v472_v27  ;;  %v1404_v33 = vadd.f32 %v1403_v29, %v1402_v28 }
 0x177   :  { %v1483_v34 = vpop.f32.mrb[27].mxu1 }
 0x178   :  { %v1484_v36 = vadd.f32 %v1483_v34, %v1482_v30  ;;  %v477_v37 = vadd.f32 %v1404_v33, %v2262_v25  ;;  %v1405_v38 = vpop.f32.mrb[28].mxu0 }
 0x179   :  { %v1406_v39 = vpop.f32.mrb[29].mxu0 }
 0x17a   :  { %v1485_v40 = vpop.f32.mrb[28].mxu1  ;;  %v2304_v41 = vadd.f32 %v1484_v36, %v477_v37  ;;  %v1407_v43 = vadd.f32 %v1406_v39, %v1405_v38 }
 0x17b   :  { %v1486_v44 = vpop.f32.mrb[29].mxu1 }
 0x17c   :  { %v1487_v45 = vadd.f32 %v1486_v44, %v1485_v40  ;;  %v482_v46 = vadd.f32 %v1407_v43, %v2262_v25  ;;  %v1408_v47 = vpop.f32.mrb[30].mxu0 }
 0x17d   :  { %v1409_v48 = vpop.f32.mrb[31].mxu0 }
 0x17e   :  { %v1488_v49 = vpop.f32.mrb[30].mxu1  ;;  %v2307_v52 = vadd.f32 %v1487_v45, %v482_v46  ;;  %v1410_v53 = vadd.f32 %v1409_v48, %v1408_v47 }
 0x17f   :  { %v1489_v54 = vpop.f32.mrb[31].mxu1 }
 0x180   :  { %v1490_v55 = vadd.f32 %v1489_v54, %v1488_v49  ;;  %v487_v56 = vadd.f32 %v1410_v53, %v2262_v25  ;;  %v1523_v57 = vpop.f32.mrb[32].mxu0 }
 0x181   :  { %v1524_v58 = vpop.f32.mrb[33].mxu0 }
 0x182   :  { %v1603_v60 = vpop.f32.mrb[32].mxu1  ;;  %v2310_v61 = vadd.f32 %v1490_v55, %v487_v56  ;;  %v1525_v63 = vadd.f32 %v1524_v58, %v1523_v57 }
 0x183   :  { %v1604_v0 = vpop.f32.mrb[33].mxu1 }
 0x184   :  { %v1605_v1 = vadd.f32 %v1604_v0, %v1603_v60  ;;  %v702_v2 = vadd.f32 %v1525_v63, %v2265_v35  ;;  %v1526_v3 = vpop.f32.mrb[34].mxu0 }
 0x185   :  { %v1527_v5 = vpop.f32.mrb[35].mxu0 }
 0x186   :  { %v1606_v6 = vpop.f32.mrb[34].mxu1  ;;  %v847_v7 = vadd.f32 %v1605_v1, %v702_v2  ;;  %v1528_v8 = vadd.f32 %v1527_v5, %v1526_v3 }
 0x187   :  { %v1607_v10 = vpop.f32.mrb[35].mxu1 }
 0x188   :  { %v1608_v11 = vadd.f32 %v1607_v10, %v1606_v6  ;;  %v925_v12 = vmax.f32 %v847_v7, 0.0  ;;  %v707_v25 = vadd.f32 %v1528_v8, %v2268_v51  ;;  %v1529_v14 = vpop.f32.mrb[36].mxu0 }
 0x189   :  { %v1530_v15 = vpop.f32.mrb[37].mxu0 }
 0x18a   :  { %v1609_v16 = vpop.f32.mrb[36].mxu1  ;;  %v852_v17 = vadd.f32 %v1608_v11, %v707_v25  ;;  %v1531_v18 = vadd.f32 %v1530_v15, %v1529_v14  ;;  %1747 = vmatprep.mubr.f32.mxu0 %v925_v12 }
 0x18b   :  { %v1610_v19 = vpop.f32.mrb[37].mxu1 }
 0x18c   :  { %v1611_v21 = vadd.f32 %v1610_v19, %v1609_v16  ;;  %v926_v23 = vmax.f32 %v852_v17, 0.0  ;;  %v712_v35 = vadd.f32 %v1531_v18, %v2271_v62  ;;  %v1532_v24 = vpop.f32.mrb[38].mxu0 }
 0x18d   :  { %v1533_v26 = vpop.f32.mrb[39].mxu0 }
 0x18e   :  { %v1612_v27 = vpop.f32.mrb[38].mxu1  ;;  %v857_v28 = vadd.f32 %v1611_v21, %v712_v35  ;;  %v1534_v29 = vadd.f32 %v1533_v26, %v1532_v24  ;;  %1748 = vmatmul.mubr.f32.vlgmr.msra.gmra.mrb[64].mxu0 %v926_v23 }
 0x18f   :  { %v1613_v30 = vpop.f32.mrb[39].mxu1 }
 0x190   :  { %v1614_v33 = vadd.f32 %v1613_v30, %v1612_v27  ;;  %v927_v51 = vmax.f32 %v857_v28, 0.0  ;;  %v717_v34 = vadd.f32 %v1534_v29, %v2274_v9  ;;  %v1535_v36 = vpop.f32.mrb[40].mxu0 }
 0x191   :  { %v1536_v37 = vpop.f32.mrb[41].mxu0 }
 0x192   :  { %v1615_v38 = vpop.f32.mrb[40].mxu1  ;;  %v862_v39 = vadd.f32 %v1614_v33, %v717_v34  ;;  %v1537_v40 = vadd.f32 %v1536_v37, %v1535_v36  ;;  %1750 = vmatprep.mubr.f32.mxu0 %v927_v51 }
 0x193   :  { %v1616_v43 = vpop.f32.mrb[41].mxu1 }
 0x194   :  { %v1617_v44 = vadd.f32 %v1616_v43, %v1615_v38  ;;  %v928_v62 = vmax.f32 %v862_v39, 0.0  ;;  %v722_v45 = vadd.f32 %v1537_v40, %v2277_v20  ;;  %v1538_v46 = vpop.f32.mrb[42].mxu0 }
 0x195   :  { %v1539_v47 = vpop.f32.mrb[43].mxu0 }
 0x196   :  { %v1618_v48 = vpop.f32.mrb[42].mxu1  ;;  %v867_v49 = vadd.f32 %v1617_v44, %v722_v45  ;;  %v1540_v53 = vadd.f32 %v1539_v47, %v1538_v46  ;;  %1751 = vmatmul.mubr.f32.gmra.mrb[66].mxu0 %v928_v62 }
 0x197   :  { %v1619_v54 = vpop.f32.mrb[43].mxu1 }
 0x198   :  { %v1620_v55 = vadd.f32 %v1619_v54, %v1618_v48  ;;  %v929_v9 = vmax.f32 %v867_v49, 0.0  ;;  %v727_v56 = vadd.f32 %v1540_v53, %v2280_v32  ;;  %v1541_v57 = vpop.f32.mrb[44].mxu0 }
 0x199   :  { %v1542_v58 = vpop.f32.mrb[45].mxu0 }
 0x19a   :  { %v1621_v60 = vpop.f32.mrb[44].mxu1  ;;  %v872_v63 = vadd.f32 %v1620_v55, %v727_v56  ;;  %v1543_v0 = vadd.f32 %v1542_v58, %v1541_v57  ;;  %1753 = vmatprep.mubr.f32.mxu0 %v929_v9 }
 0x19b   :  { %v1622_v1 = vpop.f32.mrb[45].mxu1 }
 0x19c   :  { %v1623_v2 = vadd.f32 %v1622_v1, %v1621_v60  ;;  %v930_v20 = vmax.f32 %v872_v63, 0.0  ;;  %v732_v3 = vadd.f32 %v1543_v0, %v2283_v42  ;;  %v1544_v5 = vpop.f32.mrb[46].mxu0 }
 0x19d   :  { %v1545_v6 = vpop.f32.mrb[47].mxu0 }
 0x19e   :  { %v1624_v7 = vpop.f32.mrb[46].mxu1  ;;  %v877_v8 = vadd.f32 %v1623_v2, %v732_v3  ;;  %v1546_v10 = vadd.f32 %v1545_v6, %v1544_v5  ;;  %1754 = vmatmul.mubr.f32.gmra.mrb[68].mxu0 %v930_v20 }
 0x19f   :  { %v1625_v11 = vpop.f32.mrb[47].mxu1 }
 0x1a0   :  { %v1626_v12 = vadd.f32 %v1625_v11, %v1624_v7  ;;  %v931_v32 = vmax.f32 %v877_v8, 0.0  ;;  %v737_v25 = vadd.f32 %v1546_v10, %v2286_v50  ;;  %v1547_v14 = vpop.f32.mrb[48].mxu0 }
 0x1a1   :  { %v1548_v15 = vpop.f32.mrb[49].mxu0 }
 0x1a2   :  { %v1627_v16 = vpop.f32.mrb[48].mxu1  ;;  %v882_v17 = vadd.f32 %v1626_v12, %v737_v25  ;;  %v1549_v18 = vadd.f32 %v1548_v15, %v1547_v14  ;;  %1756 = vmatprep.mubr.f32.mxu0 %v931_v32 }
 0x1a3   :  { %v1628_v19 = vpop.f32.mrb[49].mxu1 }
 0x1a4   :  { %v1629_v21 = vadd.f32 %v1628_v19, %v1627_v16  ;;  %v932_v42 = vmax.f32 %v882_v17, 0.0  ;;  %v742_v23 = vadd.f32 %v1549_v18, %v2289_v59  ;;  %v1550_v35 = vpop.f32.mrb[50].mxu0 }
 0x1a5   :  { %v1551_v24 = vpop.f32.mrb[51].mxu0 }
 0x1a6   :  { %v1630_v26 = vpop.f32.mrb[50].mxu1  ;;  %v887_v27 = vadd.f32 %v1629_v21, %v742_v23  ;;  %v1552_v28 = vadd.f32 %v1551_v24, %v1550_v35  ;;  %1757 = vmatmul.mubr.f32.gmra.mrb[70].mxu0 %v932_v42 }
 0x1a7   :  { %v1631_v29 = vpop.f32.mrb[51].mxu1 }
 0x1a8   :  { %v1632_v30 = vadd.f32 %v1631_v29, %v1630_v26  ;;  %v933_v50 = vmax.f32 %v887_v27, 0.0  ;;  %v747_v33 = vadd.f32 %v1552_v28, %v2292_v4  ;;  %v1553_v51 = vpop.f32.mrb[52].mxu0  ;;  %v1139_v27 = vld [vmem:[#allocation8 + $0x70] sm:$0xff]  ;;  %v1140_v28 = vld [vmem:[#allocation8 + $0x78] sm:$0xff] }
 0x1a9   :  { %v1554_v34 = vpop.f32.mrb[53].mxu0  ;;  %v2015_v29 = vpack.c.bf16 %v1140_v28, %v1139_v27 }
 0x1aa   :  { %v1633_v36 = vpop.f32.mrb[52].mxu1  ;;  %v892_v37 = vadd.f32 %v1632_v30, %v747_v33  ;;  %v1555_v38 = vadd.f32 %v1554_v34, %v1553_v51  ;;  %1759 = vmatprep.mubr.f32.mxu0 %v933_v50 }
 0x1ab   :  { %v1634_v39 = vpop.f32.mrb[53].mxu1  ;;  %2016 = vmatprep.subr.bf16.mxu1 %v2015_v29 }
 0x1ac   :  { %v1635_v40 = vadd.f32 %v1634_v39, %v1633_v36  ;;  %v934_v59 = vmax.f32 %v892_v37, 0.0  ;;  %v752_v43 = vadd.f32 %v1555_v38, %v2295_v13  ;;  %v1556_v44 = vpop.f32.mrb[54].mxu0  ;;  %2018 = vmatpush3.bf16.msra.mxu1 %v2015_v29 }
 0x1ad   :  { %v1557_v62 = vpop.f32.mrb[55].mxu0 }
 0x1ae   :  { %v1636_v45 = vpop.f32.mrb[54].mxu1  ;;  %v897_v46 = vadd.f32 %v1635_v40, %v752_v43  ;;  %v1558_v47 = vadd.f32 %v1557_v62, %v1556_v44  ;;  %1760 = vmatmul.mubr.f32.gmra.mrb[72].mxu0 %v934_v59 }
 0x1af   :  { %v1637_v48 = vpop.f32.mrb[55].mxu1 }
 0x1b0   :  { %v1638_v49 = vadd.f32 %v1637_v48, %v1636_v45  ;;  %v935_v4 = vmax.f32 %v897_v46, 0.0  ;;  %v757_v53 = vadd.f32 %v1558_v47, %v2298_v22  ;;  %v1559_v54 = vpop.f32.mrb[56].mxu0 }
 0x1b1   :  { %v1560_v55 = vpop.f32.mrb[57].mxu0 }
 0x1b2   :  { %v1639_v9 = vpop.f32.mrb[56].mxu1  ;;  %v902_v56 = vadd.f32 %v1638_v49, %v757_v53  ;;  %v1561_v57 = vadd.f32 %v1560_v55, %v1559_v54  ;;  %1762 = vmatprep.mubr.f32.mxu0 %v935_v4 }
 0x1b3   :  { %v1640_v58 = vpop.f32.mrb[57].mxu1 }
 0x1b4   :  { %v1641_v60 = vadd.f32 %v1640_v58, %v1639_v9  ;;  %v936_v13 = vmax.f32 %v902_v56, 0.0  ;;  %v762_v63 = vadd.f32 %v1561_v57, %v2301_v31  ;;  %v1562_v0 = vpop.f32.mrb[58].mxu0 }
 0x1b5   :  { %v1563_v1 = vpop.f32.mrb[59].mxu0 }
 0x1b6   :  { %v1642_v2 = vpop.f32.mrb[58].mxu1  ;;  %v907_v20 = vadd.f32 %v1641_v60, %v762_v63  ;;  %v1564_v3 = vadd.f32 %v1563_v1, %v1562_v0  ;;  %1763 = vmatmul.mubr.f32.gmra.mrb[74].mxu0 %v936_v13 }
 0x1b7   :  { %v1643_v5 = vpop.f32.mrb[59].mxu1 }
 0x1b8   :  { %v1644_v6 = vadd.f32 %v1643_v5, %v1642_v2  ;;  %v937_v22 = vmax.f32 %v907_v20, 0.0  ;;  %v767_v7 = vadd.f32 %v1564_v3, %v2304_v41  ;;  %v1565_v8 = vpop.f32.mrb[60].mxu0 }
 0x1b9   :  { %v1566_v10 = vpop.f32.mrb[61].mxu0 }
 0x1ba   :  { %v1645_v11 = vpop.f32.mrb[60].mxu1  ;;  %v912_v12 = vadd.f32 %v1644_v6, %v767_v7  ;;  %v1567_v32 = vadd.f32 %v1566_v10, %v1565_v8  ;;  %1765 = vmatprep.mubr.f32.mxu0 %v937_v22 }
 0x1bb   :  { %v1646_v25 = vpop.f32.mrb[61].mxu1 }
 0x1bc   :  { %v1647_v14 = vadd.f32 %v1646_v25, %v1645_v11  ;;  %v938_v31 = vmax.f32 %v912_v12, 0.0  ;;  %v772_v15 = vadd.f32 %v1567_v32, %v2307_v52  ;;  %v1568_v16 = vpop.f32.mrb[62].mxu0  ;;  %v1329_v52 = vld [vmem:[%s2353_s4] ss:$0 sm:$0xff] }
 0x1bd   :  { %v1569_v17 = vpop.f32.mrb[63].mxu0 }
 0x1be   :  { %v1648_v18 = vpop.f32.mrb[62].mxu1  ;;  %v917_v19 = vadd.f32 %v1647_v14, %v772_v15  ;;  %v1570_v21 = vadd.f32 %v1569_v17, %v1568_v16  ;;  %1766 = vmatmul.mubr.f32.gmra.mrb[76].mxu0 %v938_v31  ;;  %v1330_v15 = vld [vmem:[%s2355_s6] ss:$0 sm:$0xff]  ;;  %s2154_s6 = smov [#allocation10]  }
 0x1bf   :  { %v1649_v42 = vpop.f32.mrb[63].mxu1  ;;  %s1314_s8 = sshll.u32 %s2154_s6, 4  ;;  %s1315_s8 = int_to_ptr.vmem [resolvable:$true] %s1314_s8 }
 0x1c0   :  { %v1650_v23 = vadd.f32 %v1649_v42, %v1648_v18  ;;  %v939_v41 = vmax.f32 %v917_v19, 0.0  ;;  %v777_v35 = vadd.f32 %v1570_v21, %v2310_v61  ;;  %s2116_s9 = scalar_lea.vmem %s1315_s8, 2048  ;;  %p2121_p5 = scmp.lt.s32.totalorder %s1315_s8, %s1315_s8 }
 0x1c1   :  { %p2117_p4 = scmp.ne.s32.totalorder %s1315_s8, %s2116_s9  ;;  %p2122_p6 = scmp.lt.s32.totalorder %s2116_s9, %s2116_s9 }
 0x1c2   :  { %v922_v24 = vadd.f32 %v1650_v23, %v777_v35  ;;  %1768 = vmatprep.mubr.f32.mxu0 %v939_v41 }
 0x1c3   :  { %p2123_p7 = por %p2122_p6, %p2121_p5 }
 0x1c4   :  { %v940_v26 = vmax.f32 %v922_v24, 0.0 }
 0x1c5   :  { %p2124_p8 = pnand %p2123_p7, %p2117_p4 }
 0x1c6   :  { %1769 = vmatmul.mubr.f32.gmra.mrb[78].mxu0 %v940_v26 }
 0x261   :  { %v1749_v30 = vpop.f32.mrb[64].mxu0 }
 0x262   :  { %v1036_v50 = vadd.f32 %v1749_v30, %v1329_v52  ;;  %v1030_v33 = vpop.f32.mrb[65].mxu0 }
 0x263   :  { %v1031_v51 = vadd.f32 %v1329_v52, %v1030_v33 }
 0x264   :  { %v1110_v36 = vmax.f32 %v1036_v50, 0.0 }
 0x265   :  { %v1109_v34 = vmax.f32 %v1031_v51, 0.0 }
 0x267   :  { %1803 = vmatprep.mubr.f32.mxu1 %v1109_v34 }
 0x268   :  { %1804 = vmatmul.mubr.f32.vlgmr.msra.gmra.mrb[64].mxu1 %v1110_v36 }
 0x269   :  { %v1752_v61 = vpop.f32.mrb[66].mxu0 }
 0x26a   :  { %v1046_v37 = vadd.f32 %v1752_v61, %v1329_v52  ;;  %v1040_v38 = vpop.f32.mrb[67].mxu0 }
 0x26b   :  { %v1041_v39 = vadd.f32 %v1329_v52, %v1040_v38 }
 0x26c   :  { %v1112_v59 = vmax.f32 %v1046_v37, 0.0 }
 0x26d   :  { %v1111_v40 = vmax.f32 %v1041_v39, 0.0 }
 0x26f   :  { %1806 = vmatprep.mubr.f32.mxu1 %v1111_v40 }
 0x270   :  { %1807 = vmatmul.mubr.f32.gmra.mrb[66].mxu1 %v1112_v59 }
 0x271   :  { %v1755_v43 = vpop.f32.mrb[68].mxu0 }
 0x272   :  { %v1056_v44 = vadd.f32 %v1755_v43, %v1329_v52  ;;  %v1050_v62 = vpop.f32.mrb[69].mxu0 }
 0x273   :  { %v1051_v45 = vadd.f32 %v1329_v52, %v1050_v62 }
 0x274   :  { %v1114_v47 = vmax.f32 %v1056_v44, 0.0 }
 0x275   :  { %v1113_v46 = vmax.f32 %v1051_v45, 0.0 }
 0x277   :  { %1809 = vmatprep.mubr.f32.mxu1 %v1113_v46 }
 0x278   :  { %1810 = vmatmul.mubr.f32.gmra.mrb[68].mxu1 %v1114_v47 }
 0x279   :  { %v1758_v48 = vpop.f32.mrb[70].mxu0 }
 0x27a   :  { %v1066_v49 = vadd.f32 %v1758_v48, %v1329_v52  ;;  %v1060_v4 = vpop.f32.mrb[71].mxu0 }
 0x27b   :  { %v1061_v53 = vadd.f32 %v1329_v52, %v1060_v4 }
 0x27c   :  { %v1116_v55 = vmax.f32 %v1066_v49, 0.0 }
 0x27d   :  { %v1115_v54 = vmax.f32 %v1061_v53, 0.0 }
 0x27f   :  { %1812 = vmatprep.mubr.f32.mxu1 %v1115_v54 }
 0x280   :  { %1813 = vmatmul.mubr.f32.gmra.mrb[70].mxu1 %v1116_v55 }
 0x281   :  { %v1761_v9 = vpop.f32.mrb[72].mxu0 }
 0x282   :  { %v1076_v56 = vadd.f32 %v1761_v9, %v1329_v52  ;;  %v1070_v57 = vpop.f32.mrb[73].mxu0 }
 0x283   :  { %v1071_v58 = vadd.f32 %v1329_v52, %v1070_v57 }
 0x284   :  { %v1118_v13 = vmax.f32 %v1076_v56, 0.0 }
 0x285   :  { %v1117_v60 = vmax.f32 %v1071_v58, 0.0 }
 0x287   :  { %1815 = vmatprep.mubr.f32.mxu1 %v1117_v60 }
 0x288   :  { %1816 = vmatmul.mubr.f32.gmra.mrb[72].mxu1 %v1118_v13 }
 0x289   :  { %v1764_v63 = vpop.f32.mrb[74].mxu0 }
 0x28a   :  { %v1086_v0 = vadd.f32 %v1764_v63, %v1329_v52  ;;  %v1080_v1 = vpop.f32.mrb[75].mxu0 }
 0x28b   :  { %v1081_v2 = vadd.f32 %v1329_v52, %v1080_v1 }
 0x28c   :  { %v1120_v3 = vmax.f32 %v1086_v0, 0.0 }
 0x28d   :  { %v1119_v20 = vmax.f32 %v1081_v2, 0.0 }
 0x28f   :  { %1818 = vmatprep.mubr.f32.mxu1 %v1119_v20 }
 0x290   :  { %1819 = vmatmul.mubr.f32.gmra.mrb[74].mxu1 %v1120_v3 }
 0x291   :  { %v1767_v5 = vpop.f32.mrb[76].mxu0 }
 0x292   :  { %v1096_v6 = vadd.f32 %v1767_v5, %v1329_v52  ;;  %v1090_v22 = vpop.f32.mrb[77].mxu0 }
 0x293   :  { %v1091_v7 = vadd.f32 %v1329_v52, %v1090_v22 }
 0x294   :  { %v1122_v10 = vmax.f32 %v1096_v6, 0.0 }
 0x295   :  { %v1121_v8 = vmax.f32 %v1091_v7, 0.0 }
 0x297   :  { %1821 = vmatprep.mubr.f32.mxu1 %v1121_v8 }
 0x298   :  { %1822 = vmatmul.mubr.f32.gmra.mrb[76].mxu1 %v1122_v10 }
 0x299   :  { %v1770_v11 = vpop.f32.mrb[78].mxu0 }
 0x29a   :  { %v1106_v12 = vadd.f32 %v1770_v11, %v1329_v52  ;;  %v1100_v32 = vpop.f32.mrb[79].mxu0 }
 0x29b   :  { %v1101_v25 = vadd.f32 %v1329_v52, %v1100_v32 }
 0x29c   :  { %v1124_v31 = vmax.f32 %v1106_v12, 0.0 }
 0x29d   :  { %v1123_v14 = vmax.f32 %v1101_v25, 0.0 }
 0x29f   :  { %1824 = vmatprep.mubr.f32.mxu1 %v1123_v14 }
 0x2a0   :  { %1825 = vmatmul.mubr.f32.gmra.mrb[78].mxu1 %v1124_v31 }
 0x33b   :  { %v1805_v16 = vpop.f32.mrb[64].mxu1 }
 0x33c   :  { %v1220_v17 = vadd.f32 %v1805_v16, %v1330_v15  ;;  %v1214_v18 = vpop.f32.mrb[65].mxu1 }
 0x33d   :  { %v1215_v19 = vadd.f32 %v1330_v15, %v1214_v18 }
 0x33e   :  { %1294 = vst [vmem:[#allocation10 + $0x8] sm:$0xff] %v1220_v17 }
 0x33f   :  { %1293 = vst [vmem:[#allocation10] sm:$0xff] %v1215_v19 }
 0x343   :  { %v1808_v21 = vpop.f32.mrb[66].mxu1 }
 0x344   :  { %v1230_v42 = vadd.f32 %v1808_v21, %v1330_v15  ;;  %v1224_v23 = vpop.f32.mrb[67].mxu1 }
 0x345   :  { %v1225_v41 = vadd.f32 %v1330_v15, %v1224_v23 }
 0x346   :  { %1296 = vst [vmem:[#allocation10 + $0x18] sm:$0xff] %v1230_v42 }
 0x347   :  { %1295 = vst [vmem:[#allocation10 + $0x10] sm:$0xff] %v1225_v41 }
 0x34b   :  { %v1811_v35 = vpop.f32.mrb[68].mxu1 }
 0x34c   :  { %v1240_v24 = vadd.f32 %v1811_v35, %v1330_v15  ;;  %v1234_v26 = vpop.f32.mrb[69].mxu1 }
 0x34d   :  { %v1235_v27 = vadd.f32 %v1330_v15, %v1234_v26 }
 0x34e   :  { %1298 = vst [vmem:[#allocation10 + $0x28] sm:$0xff] %v1240_v24 }
 0x34f   :  { %1297 = vst [vmem:[#allocation10 + $0x20] sm:$0xff] %v1235_v27 }
 0x353   :  { %v1814_v28 = vpop.f32.mrb[70].mxu1 }
 0x354   :  { %v1250_v29 = vadd.f32 %v1814_v28, %v1330_v15  ;;  %v1244_v52 = vpop.f32.mrb[71].mxu1 }
 0x355   :  { %v1245_v30 = vadd.f32 %v1330_v15, %v1244_v52 }
 0x356   :  { %1300 = vst [vmem:[#allocation10 + $0x38] sm:$0xff] %v1250_v29 }
 0x357   :  { %1299 = vst [vmem:[#allocation10 + $0x30] sm:$0xff] %v1245_v30 }
 0x35b   :  { %v1817_v50 = vpop.f32.mrb[72].mxu1 }
 0x35c   :  { %v1260_v33 = vadd.f32 %v1817_v50, %v1330_v15  ;;  %v1254_v51 = vpop.f32.mrb[73].mxu1 }
 0x35d   :  { %v1255_v34 = vadd.f32 %v1330_v15, %v1254_v51 }
 0x35e   :  { %1302 = vst [vmem:[#allocation10 + $0x48] sm:$0xff] %v1260_v33 }
 0x35f   :  { %1301 = vst [vmem:[#allocation10 + $0x40] sm:$0xff] %v1255_v34 }
 0x363   :  { %v1820_v36 = vpop.f32.mrb[74].mxu1 }
 0x364   :  { %v1270_v61 = vadd.f32 %v1820_v36, %v1330_v15  ;;  %v1264_v37 = vpop.f32.mrb[75].mxu1 }
 0x365   :  { %v1265_v38 = vadd.f32 %v1330_v15, %v1264_v37 }
 0x366   :  { %1304 = vst [vmem:[#allocation10 + $0x58] sm:$0xff] %v1270_v61 }
 0x367   :  { %1303 = vst [vmem:[#allocation10 + $0x50] sm:$0xff] %v1265_v38 }
 0x36b   :  { %v1823_v39 = vpop.f32.mrb[76].mxu1 }
 0x36c   :  { %v1280_v40 = vadd.f32 %v1823_v39, %v1330_v15  ;;  %v1274_v59 = vpop.f32.mrb[77].mxu1 }
 0x36d   :  { %v1275_v43 = vadd.f32 %v1330_v15, %v1274_v59 }
 0x36e   :  { %1306 = vst [vmem:[#allocation10 + $0x68] sm:$0xff] %v1280_v40 }
 0x36f   :  { %1305 = vst [vmem:[#allocation10 + $0x60] sm:$0xff] %v1275_v43 }
 0x373   :  { %v1826_v44 = vpop.f32.mrb[78].mxu1 }
 0x374   :  { %v1290_v62 = vadd.f32 %v1826_v44, %v1330_v15  ;;  %v1284_v45 = vpop.f32.mrb[79].mxu1 }
 0x375   :  { %v1285_v46 = vadd.f32 %v1330_v15, %v1284_v45 }
 0x376   :  { %1308 = vst [vmem:[#allocation10 + $0x78] sm:$0xff] %v1290_v62 }
 0x377   :  { %1307 = vst [vmem:[#allocation10 + $0x70] sm:$0xff] %v1285_v46 }
 0x378   :  { %2127 = shalt.err (!%p2124_p8)
}
 0x379   :  { %s2128_s14 = scalar_lea.hbm %s2356_s7, 2048 }
 0x37a   :  { %p2129_p9 = scmp.ne.s32.totalorder %s2356_s7, %s2128_s14  ;;  %p2132_p10 = scmp.lt.u32.totalorder %s2128_s14, %s2356_s7 }
 0x37c   :  { %p2134_p11 = pnand %p2132_p10, %p2129_p9 }
 0x37e   :  { %2137 = shalt.err (!%p2134_p11)
}
 0x37f   :  { %1320 = dma.vmem_to_hbm [thread:$0]  %s1315_s8, 2048, %s2356_s7, [#allocation4], %s2147_s11, %s2147_s11, %s2148_s12  }
 0x380   :  { %2144 = dma.done.wait [#allocation4], 2048  }
 0x381   :  { %2145 = vsyncadd [#allocation4], 4294965248 }
 0x382   :  { %1324 = vsyncpa [#allocation3], 1 }
 0x383   :  { %1325 = vsyncpa [#allocation6], 1 }
 0x384   :  { %1326 = vsyncpa [#allocation9], 1 }
 0x385   :  { %1327 = vsyncpa [#allocation4], 1 }

</bundles_post_ra>
